<compile_context>
chip_gen: v7x
topology: tpu7x:2x2x1
jax: 0.10.0
libtpu: 0.0.40
codegen_flags: <defaults>
</compile_context>

<pallas_src>
import jax
import jax.numpy as jnp
from jax.experimental import pallas as pl
from jax.experimental.pallas import tpu as pltpu


# ---------------------------------------------------------------------------
# Fused encoder kernel (one invocation per batch element via the grid)
# ---------------------------------------------------------------------------
def _encoder_kernel(x_ref, e_ref, w1_ref, s1_ref, w2_ref, s2_ref,
                    w3_ref, s3_ref, w4_ref, s4_ref, w5_ref, s5_ref, o_ref):
    f32 = jnp.float32
    E = e_ref[...]                                   # (32, 64) 0/1 even-row selection

    def maxpool2(a):
        """MaxPool1d(kernel=2, stride=2) over rows: (R, C) -> (R//2, C)."""
        R, C = a.shape
        nxt = jnp.concatenate([a[1:], jnp.zeros((1, C), f32)], axis=0)   # a[i+1]
        m = jnp.maximum(a, nxt)                      # row 2r now holds max(a[2r], a[2r+1])
        return jnp.dot(E[:R // 2, :R], m, preferred_element_type=f32)    # keep even rows

    def conv3_bn_relu(p, w_ref, s_ref):
        """Conv1d(k=3, stride=1, pad=1) + folded-BN shift + ReLU; rows preserved."""
        R, C = p.shape
        z = jnp.zeros((1, C), f32)
        prv = jnp.concatenate([z, p[:R - 1]], axis=0)   # p[i-1], zero row at i=0
        nxt = jnp.concatenate([p[1:], z], axis=0)       # p[i+1], zero row at i=R-1
        y = jnp.dot(prv, w_ref[0], preferred_element_type=f32)
        y = y + jnp.dot(p, w_ref[1], preferred_element_type=f32)
        y = y + jnp.dot(nxt, w_ref[2], preferred_element_type=f32)
        return jnp.maximum(y + s_ref[...], 0.0)

    # ---- layer 1: Conv1d(K=64, stride=16, pad=24) as 4 shifted matmuls on the
    # strided (72, Cin*16) reshape of the zero-padded input -------------------
    x = x_ref[0]                                     # (72, Cin*16)
    y = jnp.dot(x[0:64], w1_ref[0], preferred_element_type=f32)
    y = y + jnp.dot(x[1:65], w1_ref[1], preferred_element_type=f32)
    y2 = jnp.dot(x[2:66], w1_ref[2], preferred_element_type=f32)
    y2 = y2 + jnp.dot(x[3:67], w1_ref[3], preferred_element_type=f32)
    a = jnp.maximum((y + y2) + s1_ref[...], 0.0)     # (64, 16)
    a = maxpool2(a)                                  # (32, 16)

    # ---- layers 2-4: Conv1d(k=3, pad=1) + BN + ReLU + MaxPool ----------------
    a = maxpool2(conv3_bn_relu(a, w2_ref, s2_ref))   # (16, 32)
    a = maxpool2(conv3_bn_relu(a, w3_ref, s3_ref))   # ( 8, 64)
    a = maxpool2(conv3_bn_relu(a, w4_ref, s4_ref))   # ( 4, 64)

    # ---- layer 5: Conv1d(k=3, pad=0): 4 rows -> 2 rows, then MaxPool -> 1 ----
    y = jnp.dot(a[0:2], w5_ref[0], preferred_element_type=f32)
    y = y + jnp.dot(a[1:3], w5_ref[1], preferred_element_type=f32)
    y = y + jnp.dot(a[2:4], w5_ref[2], preferred_element_type=f32)
    y = jnp.maximum(y + s5_ref[...], 0.0)            # (2, 64)
    o_ref[0] = jnp.max(y, axis=0, keepdims=True)     # final MaxPool(2,2) -> (1, 64)


# ---------------------------------------------------------------------------
# Host wrapper: BN folding, free pad/reshape of the conv1 input, pallas_call
# ---------------------------------------------------------------------------
def encoder_forward(params, x):
    """x: (B, Cin, L) float32 -> (B, 64, Lout) float32 (Encoder.forward, BN eval)."""
    B, Cin, L = x.shape
    eps = 1e-5
    K1, S1, P1 = 64, 16, 24
    L1 = (L + 2 * P1 - K1) // S1 + 1
    assert L1 == 64, (
        "fused kernel is specialized to conv1 output length 64 "
        "(input length 1024 with the default Encoder hyper-parameters)")
    R1 = 72                                     # rows of the strided reshape (>= L1+3, mult of 8)

    def fold_bn(bias, gamma, beta, mean, var):
        scale = gamma / jnp.sqrt(var + eps)
        shift = beta + scale * (bias - mean)
        return scale, shift

    # conv1 input: zero-pad + free reshape to (B, R1, Cin*S1); no gather/im2col.
    xr = jnp.pad(x.astype(jnp.float32), ((0, 0), (0, 0), (P1, R1 * S1 - P1 - L)))
    xr = xr.reshape(B, Cin, R1, S1)
    xr = jnp.transpose(xr, (0, 2, 1, 3)).reshape(B, R1, Cin * S1)   # layout no-op for Cin=1

    # conv1 weights: 4 stride-16 taps of shape (Cin*S1, 16), BN scale folded in.
    w1, b1, bn1 = params["conv1"]
    sc1, sh1 = fold_bn(b1, *bn1)
    w1f = jnp.transpose(w1.reshape(16, Cin, K1 // S1, S1), (2, 1, 3, 0))
    w1f = (w1f.reshape(K1 // S1, Cin * S1, 16) * sc1[None, None, :]).astype(jnp.float32)
    sh1 = sh1.reshape(1, -1).astype(jnp.float32)

    def fold_k3(name):
        w, b, bn = params[name]
        sc, sh = fold_bn(b, *bn)
        wf = (jnp.transpose(w, (2, 1, 0)) * sc[None, None, :]).astype(jnp.float32)
        return wf, sh.reshape(1, -1).astype(jnp.float32)   # (3, Cin, Cout), (1, Cout)

    w2f, sh2 = fold_k3("conv2")
    w3f, sh3 = fold_k3("conv3")
    w4f, sh4 = fold_k3("conv4")
    w5f, sh5 = fold_k3("conv5")

    # Host-precomputed even-row 0/1 selection matrix for MaxPool compaction.
    e_mat = (jnp.arange(64)[None, :] == 2 * jnp.arange(32)[:, None]).astype(jnp.float32)

    def resident(arr):
        zeros = (0,) * arr.ndim
        return pl.BlockSpec(arr.shape, lambda b, _z=zeros: _z)

    out = pl.pallas_call(
        _encoder_kernel,
        out_shape=jax.ShapeDtypeStruct((B, 1, 64), jnp.float32),
        grid=(B,),
        in_specs=[
            pl.BlockSpec((1, R1, Cin * S1), lambda b: (b, 0, 0)),
            resident(e_mat),
            resident(w1f), resident(sh1),
            resident(w2f), resident(sh2),
            resident(w3f), resident(sh3),
            resident(w4f), resident(sh4),
            resident(w5f), resident(sh5),
        ],
        out_specs=pl.BlockSpec((1, 1, 64), lambda b: (b, 0, 0)),
        compiler_params=pltpu.CompilerParams(dimension_semantics=("parallel",)),
    )(xr, e_mat, w1f, sh1, w2f, sh2, w3f, sh3, w4f, sh4, w5f, sh5)

    # (B, 1, 64) -> (B, 64, 1): pure (free) reshape, matches PyTorch NCL output.
    return out.reshape(B, 64, 1)


# ---------------------------------------------------------------------------
# Pure-JAX reference (eval-mode BN), used for a numerical check in __main__
# ---------------------------------------------------------------------------
def _encoder_reference(params, x):
    eps = 1e-5

    def block(x, name, stride, pad):
        w, b, (gamma, beta, mean, var) = params[name]
        y = jax.lax.conv_general_dilated(
            x, w, (stride,), [(pad, pad)],
            dimension_numbers=("NCH", "OIH", "NCH"),
            precision=jax.lax.Precision.HIGHEST)
        y = y + b[None, :, None]
        inv = (gamma / jnp.sqrt(var + eps))[None, :, None]
        y = (y - mean[None, :, None]) * inv + beta[None, :, None]
        y = jnp.maximum(y, 0.0)
        B, C, L = y.shape
        return y.reshape(B, C, L // 2, 2).max(axis=-1)

    x = block(x, "conv1", 16, 24)
    x = block(x, "conv2", 1, 1)
    x = block(x, "conv3", 1, 1)
    x = block(x, "conv4", 1, 1)
    x = block(x, "conv5", 1, 0)
    return x


# ---------------------------------------------------------------------------
# Deterministic parameter init (shapes from the PyTorch Encoder __init__)
# ---------------------------------------------------------------------------
def init_params(key, in_channels=1):
    def conv_p(k, cout, cin, ksz):
        k1, k2, k3, k4, k5, k6 = jax.random.split(k, 6)
        fan_in = float(cin * ksz)
        w = jax.random.normal(k1, (cout, cin, ksz), jnp.float32) / jnp.sqrt(fan_in)
        b = 0.01 * jax.random.normal(k2, (cout,), jnp.float32)
        gamma = 1.0 + 0.1 * jax.random.normal(k3, (cout,), jnp.float32)
        beta = 0.1 * jax.random.normal(k4, (cout,), jnp.float32)
        mean = 0.1 * jax.random.normal(k5, (cout,), jnp.float32)
        var = 0.5 + jax.random.uniform(k6, (cout,), jnp.float32)
        return (w, b, (gamma, beta, mean, var))

    ks = jax.random.split(key, 5)
    return {
        "conv1": conv_p(ks[0], 16, in_channels, 64),
        "conv2": conv_p(ks[1], 32, 16, 3),
        "conv3": conv_p(ks[2], 64, 32, 3),
        "conv4": conv_p(ks[3], 64, 64, 3),
        "conv5": conv_p(ks[4], 64, 64, 3),
    }


# ---------------------------------------------------------------------------
if __name__ == "__main__":
    in_channels = 1
    input_size = 1024          # smallest length compatible with the 5x pooled encoder
    batch = 2

    key = jax.random.PRNGKey(0)
    pkey, xkey = jax.random.split(key)
    params = init_params(pkey, in_channels)
    x = jax.random.normal(xkey, (batch, in_channels, input_size), jnp.float32)

    fwd = jax.jit(encoder_forward)
    out = fwd(params, x)
    jax.block_until_ready(out)

    assert out.shape == (batch, 64, 1), out.shape
    assert out.dtype == jnp.float32

    ref = _encoder_reference(params, x)
    err = float(jnp.max(jnp.abs(out - ref)))
    assert err < 1e-3, f"kernel/reference mismatch: max abs err {err}"

    print("KERNEL_OK")
</pallas_src>

<mosaic_0001>
module attributes {stable_mosaic.version = 11 : i64} {
  func.func @_encoder_kernel(%arg0: i32, %arg1: memref<1x72x16xf32, #tpu.memory_space<vmem>>, %arg2: memref<32x64xf32, #tpu.memory_space<vmem>>, %arg3: memref<4x16x16xf32, #tpu.memory_space<vmem>>, %arg4: memref<1x16xf32, #tpu.memory_space<vmem>>, %arg5: memref<3x16x32xf32, #tpu.memory_space<vmem>>, %arg6: memref<1x32xf32, #tpu.memory_space<vmem>>, %arg7: memref<3x32x64xf32, #tpu.memory_space<vmem>>, %arg8: memref<1x64xf32, #tpu.memory_space<vmem>>, %arg9: memref<3x64x64xf32, #tpu.memory_space<vmem>>, %arg10: memref<1x64xf32, #tpu.memory_space<vmem>>, %arg11: memref<3x64x64xf32, #tpu.memory_space<vmem>>, %arg12: memref<1x64xf32, #tpu.memory_space<vmem>>, %arg13: memref<1x1x64xf32, #tpu.memory_space<vmem>>) attributes {dimension_semantics = [#tpu.dimension_semantics<parallel>], iteration_bounds = array<i64: 2>, scalar_prefetch = 0 : i64, scratch_operands = 0 : i64, tpu.core_type = #tpu.core_type<tc>, window_params = [{transform_indices = @transform_0, window_bounds = array<i64: 1, 72, 16>}, {pipeline_mode = #tpu.pipeline_mode<synchronous>, transform_indices = @transform_1, window_bounds = array<i64: 32, 64>}, {pipeline_mode = #tpu.pipeline_mode<synchronous>, transform_indices = @transform_2, window_bounds = array<i64: 4, 16, 16>}, {pipeline_mode = #tpu.pipeline_mode<synchronous>, transform_indices = @transform_3, window_bounds = array<i64: 1, 16>}, {pipeline_mode = #tpu.pipeline_mode<synchronous>, transform_indices = @transform_4, window_bounds = array<i64: 3, 16, 32>}, {pipeline_mode = #tpu.pipeline_mode<synchronous>, transform_indices = @transform_5, window_bounds = array<i64: 1, 32>}, {pipeline_mode = #tpu.pipeline_mode<synchronous>, transform_indices = @transform_6, window_bounds = array<i64: 3, 32, 64>}, {pipeline_mode = #tpu.pipeline_mode<synchronous>, transform_indices = @transform_7, window_bounds = array<i64: 1, 64>}, {pipeline_mode = #tpu.pipeline_mode<synchronous>, transform_indices = @transform_8, window_bounds = array<i64: 3, 64, 64>}, {pipeline_mode = #tpu.pipeline_mode<synchronous>, transform_indices = @transform_9, window_bounds = array<i64: 1, 64>}, {pipeline_mode = #tpu.pipeline_mode<synchronous>, transform_indices = @transform_10, window_bounds = array<i64: 3, 64, 64>}, {pipeline_mode = #tpu.pipeline_mode<synchronous>, transform_indices = @transform_11, window_bounds = array<i64: 1, 64>}, {transform_indices = @transform_12, window_bounds = array<i64: 1, 1, 64>}]} {
    %c0 = arith.constant 0 : index
    %c0_0 = arith.constant 0 : index
    %0 = vector.load %arg2[%c0, %c0_0] : memref<32x64xf32, #tpu.memory_space<vmem>>, vector<32x64xf32>
    %c0_1 = arith.constant 0 : index
    %c0_2 = arith.constant 0 : index
    %c0_3 = arith.constant 0 : index
    %1 = vector.load %arg1[%c0_1, %c0_2, %c0_3] : memref<1x72x16xf32, #tpu.memory_space<vmem>>, vector<1x72x16xf32>
    %2 = vector.shape_cast %1 : vector<1x72x16xf32> to vector<72x16xf32>
    %3 = vector.extract_strided_slice %2 {offsets = [0, 0], sizes = [64, 16], strides = [1, 1]} : vector<72x16xf32> to vector<64x16xf32>
    %c0_4 = arith.constant 0 : index
    %c0_5 = arith.constant 0 : index
    %c0_6 = arith.constant 0 : index
    %4 = vector.load %arg3[%c0_4, %c0_5, %c0_6] : memref<4x16x16xf32, #tpu.memory_space<vmem>>, vector<1x16x16xf32>
    %5 = vector.shape_cast %4 : vector<1x16x16xf32> to vector<16x16xf32>
    %cst = arith.constant dense<0.000000e+00> : vector<64x16xf32>
    %6 = tpu.matmul %3, %5, %cst {dimension_numbers = #tpu.dot_dimension_numbers<[1], [0], [0], [1], [0, 0, 1, 1], [], []>} : vector<64x16xf32>, vector<16x16xf32>, vector<64x16xf32> -> vector<64x16xf32>
    %7 = vector.extract_strided_slice %2 {offsets = [1, 0], sizes = [64, 16], strides = [1, 1]} : vector<72x16xf32> to vector<64x16xf32>
    %c1 = arith.constant 1 : index
    %c0_7 = arith.constant 0 : index
    %c0_8 = arith.constant 0 : index
    %8 = vector.load %arg3[%c1, %c0_7, %c0_8] : memref<4x16x16xf32, #tpu.memory_space<vmem>>, vector<1x16x16xf32>
    %9 = vector.shape_cast %8 : vector<1x16x16xf32> to vector<16x16xf32>
    %cst_9 = arith.constant dense<0.000000e+00> : vector<64x16xf32>
    %10 = tpu.matmul %7, %9, %cst_9 {dimension_numbers = #tpu.dot_dimension_numbers<[1], [0], [0], [1], [0, 0, 1, 1], [], []>} : vector<64x16xf32>, vector<16x16xf32>, vector<64x16xf32> -> vector<64x16xf32>
    %11 = arith.addf %6, %10 : vector<64x16xf32>
    %12 = vector.extract_strided_slice %2 {offsets = [2, 0], sizes = [64, 16], strides = [1, 1]} : vector<72x16xf32> to vector<64x16xf32>
    %c2 = arith.constant 2 : index
    %c0_10 = arith.constant 0 : index
    %c0_11 = arith.constant 0 : index
    %13 = vector.load %arg3[%c2, %c0_10, %c0_11] : memref<4x16x16xf32, #tpu.memory_space<vmem>>, vector<1x16x16xf32>
    %14 = vector.shape_cast %13 : vector<1x16x16xf32> to vector<16x16xf32>
    %cst_12 = arith.constant dense<0.000000e+00> : vector<64x16xf32>
    %15 = tpu.matmul %12, %14, %cst_12 {dimension_numbers = #tpu.dot_dimension_numbers<[1], [0], [0], [1], [0, 0, 1, 1], [], []>} : vector<64x16xf32>, vector<16x16xf32>, vector<64x16xf32> -> vector<64x16xf32>
    %16 = vector.extract_strided_slice %2 {offsets = [3, 0], sizes = [64, 16], strides = [1, 1]} : vector<72x16xf32> to vector<64x16xf32>
    %c3 = arith.constant 3 : index
    %c0_13 = arith.constant 0 : index
    %c0_14 = arith.constant 0 : index
    %17 = vector.load %arg3[%c3, %c0_13, %c0_14] : memref<4x16x16xf32, #tpu.memory_space<vmem>>, vector<1x16x16xf32>
    %18 = vector.shape_cast %17 : vector<1x16x16xf32> to vector<16x16xf32>
    %cst_15 = arith.constant dense<0.000000e+00> : vector<64x16xf32>
    %19 = tpu.matmul %16, %18, %cst_15 {dimension_numbers = #tpu.dot_dimension_numbers<[1], [0], [0], [1], [0, 0, 1, 1], [], []>} : vector<64x16xf32>, vector<16x16xf32>, vector<64x16xf32> -> vector<64x16xf32>
    %20 = arith.addf %15, %19 : vector<64x16xf32>
    %21 = arith.addf %11, %20 : vector<64x16xf32>
    %c0_16 = arith.constant 0 : index
    %c0_17 = arith.constant 0 : index
    %22 = vector.load %arg4[%c0_16, %c0_17] : memref<1x16xf32, #tpu.memory_space<vmem>>, vector<1x16xf32>
    %23 = vector.broadcast %22 : vector<1x16xf32> to vector<64x16xf32>
    %24 = arith.addf %21, %23 : vector<64x16xf32>
    %cst_18 = arith.constant 0.000000e+00 : f32
    %25 = vector.broadcast %cst_18 : f32 to vector<64x16xf32>
    %26 = arith.maximumf %24, %25 : vector<64x16xf32>
    %27 = vector.extract_strided_slice %26 {offsets = [1, 0], sizes = [63, 16], strides = [1, 1]} : vector<64x16xf32> to vector<63x16xf32>
    %cst_19 = arith.constant 0.000000e+00 : f32
    %28 = vector.broadcast %cst_19 : f32 to vector<1x16xf32>
    %29 = tpu.concatenate %27, %28 in 0 : vector<63x16xf32>, vector<1x16xf32> -> vector<64x16xf32>
    %30 = arith.maximumf %26, %29 : vector<64x16xf32>
    %cst_20 = arith.constant dense<0.000000e+00> : vector<32x16xf32>
    %31 = tpu.matmul %0, %30, %cst_20 {dimension_numbers = #tpu.dot_dimension_numbers<[1], [0], [0], [1], [0, 0, 1, 1], [], []>} : vector<32x64xf32>, vector<64x16xf32>, vector<32x16xf32> -> vector<32x16xf32>
    %cst_21 = arith.constant 0.000000e+00 : f32
    %32 = vector.broadcast %cst_21 : f32 to vector<1x16xf32>
    %33 = vector.extract_strided_slice %31 {offsets = [0, 0], sizes = [31, 16], strides = [1, 1]} : vector<32x16xf32> to vector<31x16xf32>
    %34 = tpu.concatenate %32, %33 in 0 : vector<1x16xf32>, vector<31x16xf32> -> vector<32x16xf32>
    %35 = vector.extract_strided_slice %31 {offsets = [1, 0], sizes = [31, 16], strides = [1, 1]} : vector<32x16xf32> to vector<31x16xf32>
    %36 = tpu.concatenate %35, %32 in 0 : vector<31x16xf32>, vector<1x16xf32> -> vector<32x16xf32>
    %c0_22 = arith.constant 0 : index
    %c0_23 = arith.constant 0 : index
    %c0_24 = arith.constant 0 : index
    %37 = vector.load %arg5[%c0_22, %c0_23, %c0_24] : memref<3x16x32xf32, #tpu.memory_space<vmem>>, vector<1x16x32xf32>
    %38 = vector.shape_cast %37 : vector<1x16x32xf32> to vector<16x32xf32>
    %cst_25 = arith.constant dense<0.000000e+00> : vector<32x32xf32>
    %39 = tpu.matmul %34, %38, %cst_25 {dimension_numbers = #tpu.dot_dimension_numbers<[1], [0], [0], [1], [0, 0, 1, 1], [], []>} : vector<32x16xf32>, vector<16x32xf32>, vector<32x32xf32> -> vector<32x32xf32>
    %c1_26 = arith.constant 1 : index
    %c0_27 = arith.constant 0 : index
    %c0_28 = arith.constant 0 : index
    %40 = vector.load %arg5[%c1_26, %c0_27, %c0_28] : memref<3x16x32xf32, #tpu.memory_space<vmem>>, vector<1x16x32xf32>
    %41 = vector.shape_cast %40 : vector<1x16x32xf32> to vector<16x32xf32>
    %cst_29 = arith.constant dense<0.000000e+00> : vector<32x32xf32>
    %42 = tpu.matmul %31, %41, %cst_29 {dimension_numbers = #tpu.dot_dimension_numbers<[1], [0], [0], [1], [0, 0, 1, 1], [], []>} : vector<32x16xf32>, vector<16x32xf32>, vector<32x32xf32> -> vector<32x32xf32>
    %43 = arith.addf %39, %42 : vector<32x32xf32>
    %c2_30 = arith.constant 2 : index
    %c0_31 = arith.constant 0 : index
    %c0_32 = arith.constant 0 : index
    %44 = vector.load %arg5[%c2_30, %c0_31, %c0_32] : memref<3x16x32xf32, #tpu.memory_space<vmem>>, vector<1x16x32xf32>
    %45 = vector.shape_cast %44 : vector<1x16x32xf32> to vector<16x32xf32>
    %cst_33 = arith.constant dense<0.000000e+00> : vector<32x32xf32>
    %46 = tpu.matmul %36, %45, %cst_33 {dimension_numbers = #tpu.dot_dimension_numbers<[1], [0], [0], [1], [0, 0, 1, 1], [], []>} : vector<32x16xf32>, vector<16x32xf32>, vector<32x32xf32> -> vector<32x32xf32>
    %47 = arith.addf %43, %46 : vector<32x32xf32>
    %c0_34 = arith.constant 0 : index
    %c0_35 = arith.constant 0 : index
    %48 = vector.load %arg6[%c0_34, %c0_35] : memref<1x32xf32, #tpu.memory_space<vmem>>, vector<1x32xf32>
    %49 = vector.broadcast %48 : vector<1x32xf32> to vector<32x32xf32>
    %50 = arith.addf %47, %49 : vector<32x32xf32>
    %cst_36 = arith.constant 0.000000e+00 : f32
    %51 = vector.broadcast %cst_36 : f32 to vector<32x32xf32>
    %52 = arith.maximumf %50, %51 : vector<32x32xf32>
    %53 = vector.extract_strided_slice %52 {offsets = [1, 0], sizes = [31, 32], strides = [1, 1]} : vector<32x32xf32> to vector<31x32xf32>
    %cst_37 = arith.constant 0.000000e+00 : f32
    %54 = vector.broadcast %cst_37 : f32 to vector<1x32xf32>
    %55 = tpu.concatenate %53, %54 in 0 : vector<31x32xf32>, vector<1x32xf32> -> vector<32x32xf32>
    %56 = arith.maximumf %52, %55 : vector<32x32xf32>
    %57 = vector.extract_strided_slice %0 {offsets = [0, 0], sizes = [16, 32], strides = [1, 1]} : vector<32x64xf32> to vector<16x32xf32>
    %cst_38 = arith.constant dense<0.000000e+00> : vector<16x32xf32>
    %58 = tpu.matmul %57, %56, %cst_38 {dimension_numbers = #tpu.dot_dimension_numbers<[1], [0], [0], [1], [0, 0, 1, 1], [], []>} : vector<16x32xf32>, vector<32x32xf32>, vector<16x32xf32> -> vector<16x32xf32>
    %cst_39 = arith.constant 0.000000e+00 : f32
    %59 = vector.broadcast %cst_39 : f32 to vector<1x32xf32>
    %60 = vector.extract_strided_slice %58 {offsets = [0, 0], sizes = [15, 32], strides = [1, 1]} : vector<16x32xf32> to vector<15x32xf32>
    %61 = tpu.concatenate %59, %60 in 0 : vector<1x32xf32>, vector<15x32xf32> -> vector<16x32xf32>
    %62 = vector.extract_strided_slice %58 {offsets = [1, 0], sizes = [15, 32], strides = [1, 1]} : vector<16x32xf32> to vector<15x32xf32>
    %63 = tpu.concatenate %62, %59 in 0 : vector<15x32xf32>, vector<1x32xf32> -> vector<16x32xf32>
    %c0_40 = arith.constant 0 : index
    %c0_41 = arith.constant 0 : index
    %c0_42 = arith.constant 0 : index
    %64 = vector.load %arg7[%c0_40, %c0_41, %c0_42] : memref<3x32x64xf32, #tpu.memory_space<vmem>>, vector<1x32x64xf32>
    %65 = vector.shape_cast %64 : vector<1x32x64xf32> to vector<32x64xf32>
    %cst_43 = arith.constant dense<0.000000e+00> : vector<16x64xf32>
    %66 = tpu.matmul %61, %65, %cst_43 {dimension_numbers = #tpu.dot_dimension_numbers<[1], [0], [0], [1], [0, 0, 1, 1], [], []>} : vector<16x32xf32>, vector<32x64xf32>, vector<16x64xf32> -> vector<16x64xf32>
    %c1_44 = arith.constant 1 : index
    %c0_45 = arith.constant 0 : index
    %c0_46 = arith.constant 0 : index
    %67 = vector.load %arg7[%c1_44, %c0_45, %c0_46] : memref<3x32x64xf32, #tpu.memory_space<vmem>>, vector<1x32x64xf32>
    %68 = vector.shape_cast %67 : vector<1x32x64xf32> to vector<32x64xf32>
    %cst_47 = arith.constant dense<0.000000e+00> : vector<16x64xf32>
    %69 = tpu.matmul %58, %68, %cst_47 {dimension_numbers = #tpu.dot_dimension_numbers<[1], [0], [0], [1], [0, 0, 1, 1], [], []>} : vector<16x32xf32>, vector<32x64xf32>, vector<16x64xf32> -> vector<16x64xf32>
    %70 = arith.addf %66, %69 : vector<16x64xf32>
    %c2_48 = arith.constant 2 : index
    %c0_49 = arith.constant 0 : index
    %c0_50 = arith.constant 0 : index
    %71 = vector.load %arg7[%c2_48, %c0_49, %c0_50] : memref<3x32x64xf32, #tpu.memory_space<vmem>>, vector<1x32x64xf32>
    %72 = vector.shape_cast %71 : vector<1x32x64xf32> to vector<32x64xf32>
    %cst_51 = arith.constant dense<0.000000e+00> : vector<16x64xf32>
    %73 = tpu.matmul %63, %72, %cst_51 {dimension_numbers = #tpu.dot_dimension_numbers<[1], [0], [0], [1], [0, 0, 1, 1], [], []>} : vector<16x32xf32>, vector<32x64xf32>, vector<16x64xf32> -> vector<16x64xf32>
    %74 = arith.addf %70, %73 : vector<16x64xf32>
    %c0_52 = arith.constant 0 : index
    %c0_53 = arith.constant 0 : index
    %75 = vector.load %arg8[%c0_52, %c0_53] : memref<1x64xf32, #tpu.memory_space<vmem>>, vector<1x64xf32>
    %76 = vector.broadcast %75 : vector<1x64xf32> to vector<16x64xf32>
    %77 = arith.addf %74, %76 : vector<16x64xf32>
    %cst_54 = arith.constant 0.000000e+00 : f32
    %78 = vector.broadcast %cst_54 : f32 to vector<16x64xf32>
    %79 = arith.maximumf %77, %78 : vector<16x64xf32>
    %80 = vector.extract_strided_slice %79 {offsets = [1, 0], sizes = [15, 64], strides = [1, 1]} : vector<16x64xf32> to vector<15x64xf32>
    %cst_55 = arith.constant 0.000000e+00 : f32
    %81 = vector.broadcast %cst_55 : f32 to vector<1x64xf32>
    %82 = tpu.concatenate %80, %81 in 0 : vector<15x64xf32>, vector<1x64xf32> -> vector<16x64xf32>
    %83 = arith.maximumf %79, %82 : vector<16x64xf32>
    %84 = vector.extract_strided_slice %0 {offsets = [0, 0], sizes = [8, 16], strides = [1, 1]} : vector<32x64xf32> to vector<8x16xf32>
    %cst_56 = arith.constant dense<0.000000e+00> : vector<8x64xf32>
    %85 = tpu.matmul %84, %83, %cst_56 {dimension_numbers = #tpu.dot_dimension_numbers<[1], [0], [0], [1], [0, 0, 1, 1], [], []>} : vector<8x16xf32>, vector<16x64xf32>, vector<8x64xf32> -> vector<8x64xf32>
    %cst_57 = arith.constant 0.000000e+00 : f32
    %86 = vector.broadcast %cst_57 : f32 to vector<1x64xf32>
    %87 = vector.extract_strided_slice %85 {offsets = [0, 0], sizes = [7, 64], strides = [1, 1]} : vector<8x64xf32> to vector<7x64xf32>
    %88 = tpu.concatenate %86, %87 in 0 : vector<1x64xf32>, vector<7x64xf32> -> vector<8x64xf32>
    %89 = vector.extract_strided_slice %85 {offsets = [1, 0], sizes = [7, 64], strides = [1, 1]} : vector<8x64xf32> to vector<7x64xf32>
    %90 = tpu.concatenate %89, %86 in 0 : vector<7x64xf32>, vector<1x64xf32> -> vector<8x64xf32>
    %c0_58 = arith.constant 0 : index
    %c0_59 = arith.constant 0 : index
    %c0_60 = arith.constant 0 : index
    %91 = vector.load %arg9[%c0_58, %c0_59, %c0_60] : memref<3x64x64xf32, #tpu.memory_space<vmem>>, vector<1x64x64xf32>
    %92 = vector.shape_cast %91 : vector<1x64x64xf32> to vector<64x64xf32>
    %cst_61 = arith.constant dense<0.000000e+00> : vector<8x64xf32>
    %93 = tpu.matmul %88, %92, %cst_61 {dimension_numbers = #tpu.dot_dimension_numbers<[1], [0], [0], [1], [0, 0, 1, 1], [], []>} : vector<8x64xf32>, vector<64x64xf32>, vector<8x64xf32> -> vector<8x64xf32>
    %c1_62 = arith.constant 1 : index
    %c0_63 = arith.constant 0 : index
    %c0_64 = arith.constant 0 : index
    %94 = vector.load %arg9[%c1_62, %c0_63, %c0_64] : memref<3x64x64xf32, #tpu.memory_space<vmem>>, vector<1x64x64xf32>
    %95 = vector.shape_cast %94 : vector<1x64x64xf32> to vector<64x64xf32>
    %cst_65 = arith.constant dense<0.000000e+00> : vector<8x64xf32>
    %96 = tpu.matmul %85, %95, %cst_65 {dimension_numbers = #tpu.dot_dimension_numbers<[1], [0], [0], [1], [0, 0, 1, 1], [], []>} : vector<8x64xf32>, vector<64x64xf32>, vector<8x64xf32> -> vector<8x64xf32>
    %97 = arith.addf %93, %96 : vector<8x64xf32>
    %c2_66 = arith.constant 2 : index
    %c0_67 = arith.constant 0 : index
    %c0_68 = arith.constant 0 : index
    %98 = vector.load %arg9[%c2_66, %c0_67, %c0_68] : memref<3x64x64xf32, #tpu.memory_space<vmem>>, vector<1x64x64xf32>
    %99 = vector.shape_cast %98 : vector<1x64x64xf32> to vector<64x64xf32>
    %cst_69 = arith.constant dense<0.000000e+00> : vector<8x64xf32>
    %100 = tpu.matmul %90, %99, %cst_69 {dimension_numbers = #tpu.dot_dimension_numbers<[1], [0], [0], [1], [0, 0, 1, 1], [], []>} : vector<8x64xf32>, vector<64x64xf32>, vector<8x64xf32> -> vector<8x64xf32>
    %101 = arith.addf %97, %100 : vector<8x64xf32>
    %c0_70 = arith.constant 0 : index
    %c0_71 = arith.constant 0 : index
    %102 = vector.load %arg10[%c0_70, %c0_71] : memref<1x64xf32, #tpu.memory_space<vmem>>, vector<1x64xf32>
    %103 = vector.broadcast %102 : vector<1x64xf32> to vector<8x64xf32>
    %104 = arith.addf %101, %103 : vector<8x64xf32>
    %cst_72 = arith.constant 0.000000e+00 : f32
    %105 = vector.broadcast %cst_72 : f32 to vector<8x64xf32>
    %106 = arith.maximumf %104, %105 : vector<8x64xf32>
    %107 = vector.extract_strided_slice %106 {offsets = [1, 0], sizes = [7, 64], strides = [1, 1]} : vector<8x64xf32> to vector<7x64xf32>
    %cst_73 = arith.constant 0.000000e+00 : f32
    %108 = vector.broadcast %cst_73 : f32 to vector<1x64xf32>
    %109 = tpu.concatenate %107, %108 in 0 : vector<7x64xf32>, vector<1x64xf32> -> vector<8x64xf32>
    %110 = arith.maximumf %106, %109 : vector<8x64xf32>
    %111 = vector.extract_strided_slice %0 {offsets = [0, 0], sizes = [4, 8], strides = [1, 1]} : vector<32x64xf32> to vector<4x8xf32>
    %cst_74 = arith.constant dense<0.000000e+00> : vector<4x64xf32>
    %112 = tpu.matmul %111, %110, %cst_74 {dimension_numbers = #tpu.dot_dimension_numbers<[1], [0], [0], [1], [0, 0, 1, 1], [], []>} : vector<4x8xf32>, vector<8x64xf32>, vector<4x64xf32> -> vector<4x64xf32>
    %113 = vector.extract_strided_slice %112 {offsets = [0, 0], sizes = [2, 64], strides = [1, 1]} : vector<4x64xf32> to vector<2x64xf32>
    %c0_75 = arith.constant 0 : index
    %c0_76 = arith.constant 0 : index
    %c0_77 = arith.constant 0 : index
    %114 = vector.load %arg11[%c0_75, %c0_76, %c0_77] : memref<3x64x64xf32, #tpu.memory_space<vmem>>, vector<1x64x64xf32>
    %115 = vector.shape_cast %114 : vector<1x64x64xf32> to vector<64x64xf32>
    %cst_78 = arith.constant dense<0.000000e+00> : vector<2x64xf32>
    %116 = tpu.matmul %113, %115, %cst_78 {dimension_numbers = #tpu.dot_dimension_numbers<[1], [0], [0], [1], [0, 0, 1, 1], [], []>} : vector<2x64xf32>, vector<64x64xf32>, vector<2x64xf32> -> vector<2x64xf32>
    %117 = vector.extract_strided_slice %112 {offsets = [1, 0], sizes = [2, 64], strides = [1, 1]} : vector<4x64xf32> to vector<2x64xf32>
    %c1_79 = arith.constant 1 : index
    %c0_80 = arith.constant 0 : index
    %c0_81 = arith.constant 0 : index
    %118 = vector.load %arg11[%c1_79, %c0_80, %c0_81] : memref<3x64x64xf32, #tpu.memory_space<vmem>>, vector<1x64x64xf32>
    %119 = vector.shape_cast %118 : vector<1x64x64xf32> to vector<64x64xf32>
    %cst_82 = arith.constant dense<0.000000e+00> : vector<2x64xf32>
    %120 = tpu.matmul %117, %119, %cst_82 {dimension_numbers = #tpu.dot_dimension_numbers<[1], [0], [0], [1], [0, 0, 1, 1], [], []>} : vector<2x64xf32>, vector<64x64xf32>, vector<2x64xf32> -> vector<2x64xf32>
    %121 = arith.addf %116, %120 : vector<2x64xf32>
    %122 = vector.extract_strided_slice %112 {offsets = [2, 0], sizes = [2, 64], strides = [1, 1]} : vector<4x64xf32> to vector<2x64xf32>
    %c2_83 = arith.constant 2 : index
    %c0_84 = arith.constant 0 : index
    %c0_85 = arith.constant 0 : index
    %123 = vector.load %arg11[%c2_83, %c0_84, %c0_85] : memref<3x64x64xf32, #tpu.memory_space<vmem>>, vector<1x64x64xf32>
    %124 = vector.shape_cast %123 : vector<1x64x64xf32> to vector<64x64xf32>
    %cst_86 = arith.constant dense<0.000000e+00> : vector<2x64xf32>
    %125 = tpu.matmul %122, %124, %cst_86 {dimension_numbers = #tpu.dot_dimension_numbers<[1], [0], [0], [1], [0, 0, 1, 1], [], []>} : vector<2x64xf32>, vector<64x64xf32>, vector<2x64xf32> -> vector<2x64xf32>
    %126 = arith.addf %121, %125 : vector<2x64xf32>
    %c0_87 = arith.constant 0 : index
    %c0_88 = arith.constant 0 : index
    %127 = vector.load %arg12[%c0_87, %c0_88] : memref<1x64xf32, #tpu.memory_space<vmem>>, vector<1x64xf32>
    %128 = vector.broadcast %127 : vector<1x64xf32> to vector<2x64xf32>
    %129 = arith.addf %126, %128 : vector<2x64xf32>
    %cst_89 = arith.constant 0.000000e+00 : f32
    %130 = vector.broadcast %cst_89 : f32 to vector<2x64xf32>
    %131 = arith.maximumf %129, %130 : vector<2x64xf32>
    %cst_90 = arith.constant dense<0xFF800000> : vector<64xf32>
    %132 = vector.multi_reduction <maximumf>, %131, %cst_90 [0] : vector<2x64xf32> to vector<64xf32>
    %133 = vector.shape_cast %132 : vector<64xf32> to vector<1x64xf32>
    %c0_91 = arith.constant 0 : index
    %c0_92 = arith.constant 0 : index
    %c0_93 = arith.constant 0 : index
    %134 = vector.load %arg13[%c0_91, %c0_92, %c0_93] : memref<1x1x64xf32, #tpu.memory_space<vmem>>, vector<1x1x64xf32>
    %135 = vector.shape_cast %134 : vector<1x1x64xf32> to vector<1x64xf32>
    %136 = vector.shape_cast %133 : vector<1x64xf32> to vector<1x1x64xf32>
    tpu.vector_store %arg13[%c0_91, %c0_92, %c0_93], %136 {strides = array<i32>} : memref<1x1x64xf32, #tpu.memory_space<vmem>>, vector<1x1x64xf32>,
    return
  }
  func.func @transform_0(%arg0: i32) -> (i32, i32, i32) {
    %c0_i32 = arith.constant 0 : i32
    %c0_i32_0 = arith.constant 0 : i32
    %c0_i32_1 = arith.constant 0 : i32
    return %arg0, %c0_i32, %c0_i32_0 : i32, i32, i32
  }
  func.func @transform_1(%arg0: i32) -> (i32, i32) {
    %c0_i32 = arith.constant 0 : i32
    %c0_i32_0 = arith.constant 0 : i32
    %c0_i32_1 = arith.constant 0 : i32
    return %c0_i32, %c0_i32_0 : i32, i32
  }
  func.func @transform_2(%arg0: i32) -> (i32, i32, i32) {
    %c0_i32 = arith.constant 0 : i32
    %c0_i32_0 = arith.constant 0 : i32
    %c0_i32_1 = arith.constant 0 : i32
    %c0_i32_2 = arith.constant 0 : i32
    return %c0_i32, %c0_i32_0, %c0_i32_1 : i32, i32, i32
  }
  func.func @transform_3(%arg0: i32) -> (i32, i32) {
    %c0_i32 = arith.constant 0 : i32
    %c0_i32_0 = arith.constant 0 : i32
    %c0_i32_1 = arith.constant 0 : i32
    return %c0_i32, %c0_i32_0 : i32, i32
  }
  func.func @transform_4(%arg0: i32) -> (i32, i32, i32) {
    %c0_i32 = arith.constant 0 : i32
    %c0_i32_0 = arith.constant 0 : i32
    %c0_i32_1 = arith.constant 0 : i32
    %c0_i32_2 = arith.constant 0 : i32
    return %c0_i32, %c0_i32_0, %c0_i32_1 : i32, i32, i32
  }
  func.func @transform_5(%arg0: i32) -> (i32, i32) {
    %c0_i32 = arith.constant 0 : i32
    %c0_i32_0 = arith.constant 0 : i32
    %c0_i32_1 = arith.constant 0 : i32
    return %c0_i32, %c0_i32_0 : i32, i32
  }
  func.func @transform_6(%arg0: i32) -> (i32, i32, i32) {
    %c0_i32 = arith.constant 0 : i32
    %c0_i32_0 = arith.constant 0 : i32
    %c0_i32_1 = arith.constant 0 : i32
    %c0_i32_2 = arith.constant 0 : i32
    return %c0_i32, %c0_i32_0, %c0_i32_1 : i32, i32, i32
  }
  func.func @transform_7(%arg0: i32) -> (i32, i32) {
    %c0_i32 = arith.constant 0 : i32
    %c0_i32_0 = arith.constant 0 : i32
    %c0_i32_1 = arith.constant 0 : i32
    return %c0_i32, %c0_i32_0 : i32, i32
  }
  func.func @transform_8(%arg0: i32) -> (i32, i32, i32) {
    %c0_i32 = arith.constant 0 : i32
    %c0_i32_0 = arith.constant 0 : i32
    %c0_i32_1 = arith.constant 0 : i32
    %c0_i32_2 = arith.constant 0 : i32
    return %c0_i32, %c0_i32_0, %c0_i32_1 : i32, i32, i32
  }
  func.func @transform_9(%arg0: i32) -> (i32, i32) {
    %c0_i32 = arith.constant 0 : i32
    %c0_i32_0 = arith.constant 0 : i32
    %c0_i32_1 = arith.constant 0 : i32
    return %c0_i32, %c0_i32_0 : i32, i32
  }
  func.func @transform_10(%arg0: i32) -> (i32, i32, i32) {
    %c0_i32 = arith.constant 0 : i32
    %c0_i32_0 = arith.constant 0 : i32
    %c0_i32_1 = arith.constant 0 : i32
    %c0_i32_2 = arith.constant 0 : i32
    return %c0_i32, %c0_i32_0, %c0_i32_1 : i32, i32, i32
  }
  func.func @transform_11(%arg0: i32) -> (i32, i32) {
    %c0_i32 = arith.constant 0 : i32
    %c0_i32_0 = arith.constant 0 : i32
    %c0_i32_1 = arith.constant 0 : i32
    return %c0_i32, %c0_i32_0 : i32, i32
  }
  func.func @transform_12(%arg0: i32) -> (i32, i32, i32) {
    %c0_i32 = arith.constant 0 : i32
    %c0_i32_0 = arith.constant 0 : i32
    %c0_i32_1 = arith.constant 0 : i32
    return %arg0, %c0_i32, %c0_i32_0 : i32, i32, i32
  }
}

</mosaic_0001>

<bundles_post_ra>
// kernel: encoder_forward.1
= control target key start
LH: loop header
LB: loop body
LE: loop exit
PB: predicated region body
PF: predicated region fallthrough
CT: control target
= control target key end

     0   :  { %17 = vsyncpa [#allocation3], 0  ;;  %s4133_s0 = inlined_call_operand.vmem [shape: f32[2,72,16], index: 0, kind: input, shape index: {}]   ;;  %s4134_s1 = inlined_call_operand.vmem [shape: f32[32,64], index: 1, kind: input, shape index: {}]   ;;  %s4135_s2 = inlined_call_operand.vmem [shape: f32[4,16,16], index: 2, kind: input, shape index: {}]   ;;  %s4136_s3 = inlined_call_operand.vmem [shape: f32[1,16], index: 3, kind: input, shape index: {}]   ;;  %s4137_s4 = inlined_call_operand.vmem [shape: f32[3,16,32], index: 4, kind: input, shape index: {}]   ;;  %s4138_s5 = inlined_call_operand.vmem [shape: f32[1,32], index: 5, kind: input, shape index: {}]   ;;  %s4139_s6 = inlined_call_operand.vmem [shape: f32[3,32,64], index: 6, kind: input, shape index: {}]   ;;  %s4140_s7 = inlined_call_operand.vmem [shape: f32[1,64], index: 7, kind: input, shape index: {}]   ;;  %s4141_s8 = inlined_call_operand.vmem [shape: f32[3,64,64], index: 8, kind: input, shape index: {}]   ;;  %s4142_s9 = inlined_call_operand.vmem [shape: f32[1,64], index: 9, kind: input, shape index: {}]   ;;  %s4143_s10 = inlined_call_operand.vmem [shape: f32[3,64,64], index: 10, kind: input, shape index: {}]   ;;  %s4144_s11 = inlined_call_operand.vmem [shape: f32[1,64], index: 11, kind: input, shape index: {}]   ;;  %s4145_s12 = inlined_call_operand.hbm [shape: f32[2,1,64], index: 12, kind: output, shape index: {}]  }
   0x1   :  { %19 = vsyncpa [#allocation3 + $0x1], 0  ;;  %s3552_s21 = smov 0   ;;  %s3554_s22 = smov 0  }
   0x2   :  { %s3556_s23 = smov 0   ;;  %s3558_s24 = smov 0  }
   0x3 LB: > { %4147 = sst [smem:[#allocation5_spill]] %s3477_s23  ;;  %s3573_s25 = sadd.s32 4294967295, %s3481_s24   ;;  %s3481_s24 = sphi %s3558_s24, %s4155_s24   ;;  %s3477_s23 = sphi %s3556_s23, %s4152_s23   ;;  %s3473_s22 = sphi %s3554_s22, %s4154_s22   ;;  %s3469_s21 = sphi %s3552_s21, %s4153_s21  }
   0x4   : > { %s2615_s26 = sadd.s32 4294967294, %s3481_s24   ;;  %s3577_s27 = sadd.s32 1, %s3481_s24  }
   0x5   : > { %s289_s28 = sadd.s32 1, %s3477_s23  ;;  %s286_s29 = ssub.s32 %s3481_s24, %s3577_s27 }
   0x6   : > { %p299_p0 = scmp.ne.s32.totalorder %s3477_s23, %s3473_s22  ;;  %p287_p1 = scmp.eq.s32.totalorder %s286_s29, 0 }
   0x7   : > { %p300_p2 = scmp.eq.s32.totalorder %s3573_s25, 1  ;;  %p305_p3 = scmp.ne.s32.totalorder %s3473_s22, %s3469_s21 }
   0x8   : > { %p306_p4 = scmp.eq.s32.totalorder %s2615_s26, 1  ;;  %p2618_p7 = scmp.ge.s32.totalorder %s3481_s24, 1 }
   0x9   : > { %s3588_s30 = scalar_select %p287_p1, %s3477_s23, %s289_s28  }
   0xa   : > { %p3590_p5 = por %p300_p2, %p299_p0  ;;  %p3594_p6 = por %p306_p4, %p305_p3 }
   0xb   : > { %4148 = sst [smem:[#allocation6_spill]] %s3588_s30  ;;  %p365_p8 = scmp.lt.s32.totalorder %s3481_s24, 3 }
   0xd   : > { %p366_p9 = pnand %p2618_p7, %p365_p8 }
   0xe   : > { %v2620_v0 = vld [vmem:[%s4135_s2 + $0x10] sm:$0xff] (!%p366_p9)  ;;  %v2621_v1 = vld [vmem:[%s4135_s2 + $0x18] sm:$0xff] (!%p366_p9)  ;;  %p406_p10 = scmp.lt.s32.totalorder (!%p366_p9), %s3573_s25, 1  ;;  %v424_v2 = vld [vmem:[%s4135_s2] sm:$0xff] (!%p366_p9)  ;;  %vm438_vm0 = vcmask (!%p366_p9), 1046528   ;;  %vm456_vm1 = vcmask (!%p366_p9), 130048  }
   0xf   : > { %369 = sbr.rel (%p366_p9) target bundleno = 2174 (0x87e), region = 68  ;;  %v3181_v3 = vpack.c.bf16 (!%p366_p9), %v2621_v1, %v2620_v0  ;;  %v425_v4 = vld [vmem:[%s4135_s2 + $0x8] sm:$0xff] (!%p366_p9)  ;;  %v2640_v6 = vld [vmem:[%s4135_s2 + $0x30] sm:$0xff] (!%p366_p9)  ;;  %v2641_v7 = vld [vmem:[%s4135_s2 + $0x38] sm:$0xff] (!%p366_p9)  ;;  %vm705_vm2 = vcmask (!%p366_p9), 1044480   ;;  %vm844_vm3 = vcmask (!%p366_p9), 1045504  }
  0x10   : > { %v3185_v5 = vpack.c.bf16 (!%p366_p9), %v425_v4, %v424_v2  ;;  %v3189_v23 = vpack.c.bf16 (!%p366_p9), %v2641_v7, %v2640_v6  ;;  %v2638_v35 = vld [vmem:[%s4135_s2 + $0x20] sm:$0xff] (!%p366_p9)  ;;  %v2639_v36 = vld [vmem:[%s4135_s2 + $0x28] sm:$0xff] (!%p366_p9)  ;;  %vm1054_vm4 = vcmask (!%p366_p9), 523264   ;;  %vm1156_vm5 = vcmask (!%p366_p9), 1040384   ;;  %s404_s23 = sand.u32 (!%p366_p9), 1, %s3473_s22   ;;  %s2739_s30 = sshll.u32 (!%p366_p9), %s3573_s25, 4 }
  0x11   : > { %3182 = vmatprep.subr.bf16.mxu0 (!%p366_p9), %v3181_v3  ;;  %v3193_v37 = vpack.c.bf16 (!%p366_p9), %v2639_v36, %v2638_v35  ;;  %vm1503_vm6 = vcmask (!%p366_p9), 261120   ;;  %vm3484_vm7 = vmmov (!%p366_p9), 0   ;;  %vm2209_vm8 = vcmask (!%p366_p9), 64512   ;;  %s405_s26 = scalar_lea.vmem (!%p366_p9), [#allocation2], %s404_s23  ;;  %s4091_s16 = scalar_lea.hbm (!%p366_p9), %s4145_s12, %s2739_s30 }
  0x12   : > { %3184 = vmatpush3.bf16.msra.mxu0 (!%p366_p9), %v3181_v3  ;;  %vm2537_vm9 = vcmask (!%p366_p9), 517120   ;;  %s2560_s28 = sshll.u32 (!%p366_p9), %s405_s26, 4  ;;  %vm2545_vm10 = vcmask (!%p366_p9), 516096   ;;  %s4093_s28 = int_to_ptr.vmem [resolvable:$true] %s2560_s28 }
  0x13   : > { %3186 = vmatprep.subr.bf16.mxu0 (!%p366_p9), %v3185_v5  ;;  %s3419_s18 = scalar_lea.vmem (!%p366_p9), %s4093_s28, 16 }
  0x14   : > { %p3420_p11 = scmp.ne.s32.totalorder (!%p366_p9), %s4093_s28, %s3419_s18 }
  0x16   : > { %s407_s29 = scalar_select %p406_p10, %s3573_s25, 1 }
  0x17   : > { %p3421_p12 = pnand %p3420_p11, %p3590_p5  ;;  %s3486_s25 = smov [#allocation2]  }
  0x18   : > { %s3376_s15 = smul.u32 72, %s407_s29  ;;  %s3423_s19 = sshll.u32 %s3486_s25, 4  ;;  %s3424_s19 = int_to_ptr.vmem [resolvable:$false] %s3423_s19 }
  0x19   : > { %p3422_p13 = pneg %p3421_p12  ;;  %s3425_s20 = scalar_lea.vmem %s3424_s19, 32 }
  0x1a   : > { %s3617_s17 = scalar_lea.vmem %s4133_s0, %s3376_s15  ;;  %p3426_p0 = scmp.lt.s32.totalorder %s4093_s28, %s3424_s19 }
  0x1b   : > { %v3626_v8 = vld [vmem:[%s3617_s17] sm:$0xff]  ;;  %v3629_v9 = vld [vmem:[%s3617_s17 + $0x8] sm:$0xff]  ;;  %v3632_v10 = vld [vmem:[%s3617_s17 + $0x10] sm:$0xff]  ;;  %p3427_p1 = scmp.lt.s32.totalorder %s3425_s20, %s3419_s18 }
  0x1c   : > { %v439_v11 = vrot.slane %v3626_v8, 1  ;;  %v440_v12 = vrot.slane %v3629_v9, 1  ;;  %v442_v13 = vrot.slane %v3632_v10, 1  ;;  %v3638_v14 = vld [vmem:[%s3617_s17 + $0x18] sm:$0xff]  ;;  %v3641_v15 = vld [vmem:[%s3617_s17 + $0x20] sm:$0xff]  ;;  %v3644_v16 = vld [vmem:[%s3617_s17 + $0x28] sm:$0xff] }
  0x1d   : > { %v444_v17 = vrot.slane %v3638_v14, 1  ;;  %v446_v18 = vrot.slane %v3641_v15, 1  ;;  %v448_v21 = vrot.slane %v3644_v16, 1  ;;  %v3652_v22 = vld [vmem:[%s3617_s17 + $0x30] sm:$0xff]  ;;  %v3657_v25 = vld [vmem:[%s3617_s17 + $0x38] sm:$0xff]  ;;  %v3666_v30 = vld [vmem:[%s3617_s17 + $0x40] sm:$0xff]  ;;  %p3428_p2 = por %p3427_p1, %p3426_p0 }
  0x1e   : > { %v441_v19 = vsel %vm438_vm0, %v439_v11, %v440_v12  ;;  %v443_v20 = vsel %vm438_vm0, %v440_v12, %v442_v13  ;;  %v450_v27 = vrot.slane %v3652_v22, 1  ;;  %v452_v29 = vrot.slane %v3657_v25, 1  ;;  %s2548_s17 = scalar_lea.sflag [#allocation3], %s404_s23 }
  0x1f   : > { %2899 = vmatprep.mubr.msk.f32.mxu0 %vm456_vm1, %v441_v19  ;;  %v445_v24 = vsel %vm438_vm0, %v442_v13, %v444_v17  ;;  %v447_v26 = vsel %vm438_vm0, %v444_v17, %v446_v18  ;;  %v449_v28 = vsel %vm438_vm0, %v446_v18, %v448_v21  ;;  %v454_v32 = vrot.slane %v3666_v30, 1  ;;  %p3429_p3 = pnand %p3428_p2, %p3422_p13 }
  0x20   : > { %2900 = vmatmul.mubr.msk.f32.vlgmr.msra.gmra.mrb[0].mxu0 %vm456_vm1, %v443_v20  ;;  %v451_v31 = vsel %vm438_vm0, %v448_v21, %v450_v27  ;;  %v453_v33 = vsel %vm438_vm0, %v450_v27, %v452_v29  ;;  %v706_v38 = vrot.slane %v3626_v8, 3  ;;  %v707_v39 = vrot.slane %v3629_v9, 3 }
  0x21   : > { %2902 = vmatprep.mubr.msk.f32.mxu0 %vm456_vm1, %v445_v24  ;;  %3188 = vmatpush3.bf16.msra.mxu0 %v3185_v5  ;;  %v455_v34 = vsel %vm438_vm0, %v452_v29, %v454_v32  ;;  %v709_v40 = vrot.slane %v3632_v10, 3  ;;  %v711_v42 = vrot.slane %v3638_v14, 3  ;;  %v713_v44 = vrot.slane %v3641_v15, 3 }
  0x22   : > { %3190 = vmatprep.subr.bf16.mxu0 %v3189_v23  ;;  %v708_v41 = vsel %vm705_vm2, %v706_v38, %v707_v39  ;;  %v715_v46 = vrot.slane %v3644_v16, 3  ;;  %v717_v48 = vrot.slane %v3652_v22, 3  ;;  %v719_v50 = vrot.slane %v3657_v25, 3 }
  0x23   : > { %v710_v43 = vsel %vm705_vm2, %v707_v39, %v709_v40  ;;  %v712_v45 = vsel %vm705_vm2, %v709_v40, %v711_v42  ;;  %v714_v47 = vsel %vm705_vm2, %v711_v42, %v713_v44  ;;  %v721_v52 = vrot.slane %v3666_v30, 3 }
  0x24   : > { %2903 = vmatmul.mubr.msk.f32.gmra.mrb[2].mxu0 %vm456_vm1, %v447_v26  ;;  %v716_v49 = vsel %vm705_vm2, %v713_v44, %v715_v46  ;;  %v718_v51 = vsel %vm705_vm2, %v715_v46, %v717_v48  ;;  %v720_v53 = vsel %vm705_vm2, %v717_v48, %v719_v50  ;;  %v845_v54 = vrot.slane %v3626_v8, 2 }
  0x25   : > { %2905 = vmatprep.mubr.msk.f32.mxu0 %vm456_vm1, %v449_v28  ;;  %v846_v55 = vrot.slane %v3629_v9, 2  ;;  %v722_v56 = vsel %vm705_vm2, %v719_v50, %v721_v52  ;;  %v848_v57 = vrot.slane %v3632_v10, 2  ;;  %v850_v59 = vrot.slane %v3638_v14, 2 }
  0x26   : > { %v852_v61 = vrot.slane %v3641_v15, 2  ;;  %v854_v63 = vrot.slane %v3644_v16, 2  ;;  %v856_v1 = vrot.slane %v3652_v22, 2  ;;  %v858_v3 = vrot.slane %v3657_v25, 2 }
  0x27   : > { %v847_v58 = vsel %vm844_vm3, %v845_v54, %v846_v55  ;;  %v849_v60 = vsel %vm844_vm3, %v846_v55, %v848_v57  ;;  %v851_v62 = vsel %vm844_vm3, %v848_v57, %v850_v59  ;;  %v860_v5 = vrot.slane %v3666_v30, 2 }
  0x28   : > { %2906 = vmatmul.mubr.msk.f32.gmra.mrb[4].mxu0 %vm456_vm1, %v451_v31  ;;  %v853_v0 = vsel %vm844_vm3, %v850_v59, %v852_v61  ;;  %v855_v2 = vsel %vm844_vm3, %v852_v61, %v854_v63  ;;  %v857_v4 = vsel %vm844_vm3, %v854_v63, %v856_v1  ;;  %v859_v6 = vsel %vm844_vm3, %v856_v1, %v858_v3  ;;  %v2663_v63 = vld [vmem:[%s4137_s4 + $0x10] sm:$0xff] }
  0x29   : > { %2908 = vmatprep.mubr.msk.f32.mxu0 %vm456_vm1, %v453_v33  ;;  %v861_v7 = vsel %vm844_vm3, %v858_v3, %v860_v5  ;;  %v414_v3 = vld [vmem:[%s4134_s1 + $0x18] sm:$0xff]  ;;  %v1176_v5 = vld [vmem:[%s4137_s4 + $0x8] sm:$0xff] }
  0x2c   : > { %2909 = vmatmul.mubr.msk.f32.gmra.mrb[6].mxu0 %vm456_vm1, %v455_v34 }
  0x2d   : > { %2915 = vmatprep.mubr.msk.f32.mxu0 %vm456_vm1, %v3626_v8  ;;  %v3752_v8 = vld [vmem:[%s4134_s1] sm:$0xff] }
  0x30   : > { %2916 = vmatmul.mubr.msk.f32.vlgmr.msra.gmra.mrb[0].mxu0 %vm456_vm1, %v3629_v9  ;;  %v413_v9 = vld [vmem:[%s4134_s1 + $0x10] sm:$0xff] }
  0x31   : > { %2918 = vmatprep.mubr.msk.f32.mxu0 %vm456_vm1, %v3632_v10  ;;  %3192 = vmatpush3.bf16.msra.mxu0 %v3189_v23  ;;  %v2658_v10 = vld [vmem:[%s4136_s3] ss:$0 sm:$0xff] }
  0x32   : > { %3194 = vmatprep.subr.bf16.mxu0 %v3193_v37  ;;  %2978 = vmatprep.mubr.msk.f32.mxu1 %vm1054_vm4, %v413_v9  ;;  %v2674_v9 = vld [vmem:[%s4137_s4 + $0x28] sm:$0xff] }
  0x34   : > { %2919 = vmatmul.mubr.msk.f32.gmra.mrb[2].mxu0 %vm456_vm1, %v3638_v14 }
  0x35   : > { %2921 = vmatprep.mubr.msk.f32.mxu0 %vm456_vm1, %v3641_v15 }
  0x38   : > { %2922 = vmatmul.mubr.msk.f32.gmra.mrb[4].mxu0 %vm456_vm1, %v3644_v16 }
  0x39   : > { %2924 = vmatprep.mubr.msk.f32.mxu0 %vm456_vm1, %v3652_v22 }
  0x3c   : > { %2925 = vmatmul.mubr.msk.f32.gmra.mrb[6].mxu0 %vm456_vm1, %v3657_v25 }
  0x3d   : > { %2931 = vmatprep.mubr.msk.f32.mxu0 %vm456_vm1, %v708_v41 }
  0x40   : > { %2932 = vmatmul.mubr.msk.f32.vlgmr.msra.gmra.mrb[0].mxu0 %vm456_vm1, %v710_v43 }
  0x41   : > { %2934 = vmatprep.mubr.msk.f32.mxu0 %vm456_vm1, %v712_v45  ;;  %3196 = vmatpush3.bf16.msra.mxu0 %v3193_v37 }
  0x44   : > { %2935 = vmatmul.mubr.msk.f32.gmra.mrb[2].mxu0 %vm456_vm1, %v714_v47 }
  0x45   : > { %2937 = vmatprep.mubr.msk.f32.mxu0 %vm456_vm1, %v716_v49 }
  0x48   : > { %2938 = vmatmul.mubr.msk.f32.gmra.mrb[4].mxu0 %vm456_vm1, %v718_v51 }
  0x49   : > { %2940 = vmatprep.mubr.msk.f32.mxu0 %vm456_vm1, %v720_v53 }
  0x4c   : > { %2941 = vmatmul.mubr.msk.f32.gmra.mrb[6].mxu0 %vm456_vm1, %v722_v56 }
  0x4d   : > { %2947 = vmatprep.mubr.msk.f32.mxu0 %vm456_vm1, %v847_v58 }
  0x50   : > { %2948 = vmatmul.mubr.msk.f32.vlgmr.msra.gmra.mrb[0].mxu0 %vm456_vm1, %v849_v60 }
  0x51   : > { %2950 = vmatprep.mubr.msk.f32.mxu0 %vm456_vm1, %v851_v62 }
  0x54   : > { %2951 = vmatmul.mubr.msk.f32.gmra.mrb[2].mxu0 %vm456_vm1, %v853_v0  ;;  %v2664_v0 = vld [vmem:[%s4137_s4 + $0x18] sm:$0xff] }
  0x55   : > { %2953 = vmatprep.mubr.msk.f32.mxu0 %vm456_vm1, %v855_v2  ;;  %v3213_v1 = vpack.c.bf16 %v2664_v0, %v2663_v63  ;;  %v3780_v2 = vld [vmem:[%s4134_s1 + $0x8] sm:$0xff]  ;;  %v1595_v0 = vld [vmem:[%s4139_s6] sm:$0xff] }
  0x58   : > { %2954 = vmatmul.mubr.msk.f32.gmra.mrb[4].mxu0 %vm456_vm1, %v857_v4  ;;  %v1175_v4 = vld [vmem:[%s4137_s4] sm:$0xff] }
  0x59   : > { %2956 = vmatprep.mubr.msk.f32.mxu0 %vm456_vm1, %v859_v6  ;;  %v3217_v6 = vpack.c.bf16 %v1176_v5, %v1175_v4  ;;  %v1597_v4 = vld [vmem:[%s4139_s6 + $0x10] sm:$0xff] }
  0x5c   : > { %2957 = vmatmul.mubr.msk.f32.gmra.mrb[6].mxu0 %vm456_vm1, %v861_v7  ;;  %v2673_v7 = vld [vmem:[%s4137_s4 + $0x20] sm:$0xff] }
  0x5d   : > { %2975 = vmatprep.mubr.msk.f32.mxu0 %vm1054_vm4, %v3752_v8 }
 0x123   : > { %v2949_v11 = vpop.f32.mrb[0].mxu0 }
 0x124   : > { %v999_v12 = vadd.f32 %v2949_v11, %v2658_v10  ;;  %v944_v13 = vpop.f32.mrb[1].mxu0 }
 0x125   : > { %v998_v14 = vadd.f32 %v2658_v10, %v944_v13 }
 0x126   : > { %v1007_v15 = vmax.f32 %v999_v12, 0.0  ;;  %v3221_v12 = vpack.c.bf16 %v2674_v9, %v2673_v7 }
 0x127   : > { %v1006_v16 = vmax.f32 %v998_v14, 0.0  ;;  %v2952_v17 = vpop.f32.mrb[2].mxu0 }
 0x128   : > { %v1023_v18 = vrot.slane %v1007_v15, 1  ;;  %v1001_v19 = vadd.f32 %v2952_v17, %v2658_v10  ;;  %v954_v20 = vpop.f32.mrb[3].mxu0 }
 0x129   : > { %v1022_v21 = vrot.slane %v1006_v16, 1  ;;  %v1000_v22 = vadd.f32 %v2658_v10, %v954_v20 }
 0x12a   : > { %v1009_v23 = vmax.f32 %v1001_v19, 0.0 }
 0x12b   : > { %v1024_v24 = vsel %vm438_vm0, %v1022_v21, %v1023_v18  ;;  %v1008_v25 = vmax.f32 %v1000_v22, 0.0  ;;  %v2955_v26 = vpop.f32.mrb[4].mxu0 }
 0x12c   : > { %v1046_v27 = vmax.f32 %v1006_v16, %v1024_v24  ;;  %v1027_v28 = vrot.slane %v1009_v23, 1  ;;  %v1003_v29 = vadd.f32 %v2955_v26, %v2658_v10  ;;  %v964_v30 = vpop.f32.mrb[5].mxu0 }
 0x12d   : > { %v1025_v31 = vrot.slane %v1008_v25, 1  ;;  %v1002_v32 = vadd.f32 %v2658_v10, %v964_v30 }
 0x12e   : > { %v1011_v33 = vmax.f32 %v1003_v29, 0.0 }
 0x12f   : > { %v1026_v34 = vsel %vm438_vm0, %v1023_v18, %v1025_v31  ;;  %v1028_v35 = vsel %vm438_vm0, %v1025_v31, %v1027_v28  ;;  %v1010_v36 = vmax.f32 %v1002_v32, 0.0  ;;  %v2958_v37 = vpop.f32.mrb[6].mxu0  ;;  %v2679_v31 = vld [vmem:[%s4138_s5] ss:$0 sm:$0xff] }
 0x130   : > { %v1047_v38 = vmax.f32 %v1007_v15, %v1026_v34  ;;  %v1048_v39 = vmax.f32 %v1008_v25, %v1028_v35  ;;  %v1031_v40 = vrot.slane %v1011_v33, 1  ;;  %v1005_v41 = vadd.f32 %v2958_v37, %v2658_v10  ;;  %v974_v42 = vpop.f32.mrb[7].mxu0 }
 0x131   : > { %v1029_v43 = vrot.slane %v1010_v36, 1  ;;  %v1004_v44 = vadd.f32 %v2658_v10, %v974_v42 }
 0x132   : > { %v1013_v45 = vmax.f32 %v1005_v41, 0.0  ;;  %v3197_v46 = vpack.c.bf16 %v1047_v38, %v1046_v27 }
 0x133   : > { %v1030_v47 = vsel %vm438_vm0, %v1027_v28, %v1029_v43  ;;  %v1032_v48 = vsel %vm438_vm0, %v1029_v43, %v1031_v40  ;;  %v1012_v49 = vmax.f32 %v1004_v44, 0.0 }
 0x134   : > { %v1049_v50 = vmax.f32 %v1009_v23, %v1030_v47  ;;  %v1050_v51 = vmax.f32 %v1010_v36, %v1032_v48  ;;  %v1035_v52 = vrot.slane %v1013_v45, 1  ;;  %3198 = vmatprep.subr.bf16.mxu0 %v3197_v46  ;;  %3332 = vmatprep.subr.bf16.mxu1 %v3197_v46 }
 0x135   : > { %v1033_v53 = vrot.slane %v1012_v49, 1  ;;  %3200 = vmatpush3.bf16.msra.mxu0 %v3197_v46  ;;  %3336 = vmatpush3.bf16.msra.mxu1 %v3197_v46 }
 0x136   : > { %v1045_v54 = vsel %vm438_vm0, %v1035_v52, 0.0  ;;  %v3201_v55 = vpack.c.bf16 %v1049_v50, %v1048_v39 }
 0x137   : > { %v1053_v56 = vmax.f32 %v1013_v45, %v1045_v54  ;;  %v1034_v57 = vsel %vm438_vm0, %v1031_v40, %v1033_v53  ;;  %v1036_v58 = vsel %vm438_vm0, %v1033_v53, %v1035_v52 }
 0x138   : > { %v1051_v59 = vmax.f32 %v1011_v33, %v1034_v57  ;;  %v1052_v60 = vmax.f32 %v1012_v49, %v1036_v58  ;;  %3202 = vmatprep.subr.bf16.mxu0 %v3201_v55  ;;  %3333 = vmatprep.subr.bf16.mxu1 %v3201_v55  ;;  %v2682_v58 = vld [vmem:[%s4139_s6 + $0x20] sm:$0xff] }
 0x139   : > { %3204 = vmatpush3.bf16.msra.mxu0 %v3201_v55  ;;  %3337 = vmatpush3.bf16.msra.mxu1 %v3201_v55 }
 0x13a   : > { %v3209_v61 = vpack.c.bf16 %v1053_v56, %v1052_v60  ;;  %v3205_v62 = vpack.c.bf16 %v1051_v59, %v1050_v51  ;;  %v2683_v59 = vld [vmem:[%s4139_s6 + $0x28] sm:$0xff] }
 0x13b   : > { %v3233_v60 = vpack.c.bf16 %v2683_v59, %v2682_v58  ;;  %v2705_v58 = vld [vmem:[%s4141_s8 + $0x78] sm:$0xff] }
 0x13c   : > { %3206 = vmatprep.subr.bf16.mxu0 %v3205_v62  ;;  %3334 = vmatprep.subr.bf16.mxu1 %v3205_v62 }
 0x13d   : > { %3208 = vmatpush3.bf16.msra.mxu0 %v3205_v62  ;;  %3338 = vmatpush3.bf16.msra.mxu1 %v3205_v62  ;;  %v2685_v62 = vld [vmem:[%s4139_s6 + $0x38] sm:$0xff] }
 0x13e   : > { %3210 = vmatprep.subr.bf16.mxu0 %v3209_v61  ;;  %3335 = vmatprep.subr.bf16.mxu1 %v3209_v61 }
 0x141   : > { %3212 = vmatpush3.bf16.msra.mxu0 %v3209_v61  ;;  %3339 = vmatpush3.bf16.msra.mxu1 %v3209_v61  ;;  %v2684_v61 = vld [vmem:[%s4139_s6 + $0x30] sm:$0xff] }
 0x142   : > { %3214 = vmatprep.subr.bf16.mxu1 %v3213_v1  ;;  %v3237_v63 = vpack.c.bf16 %v2685_v62, %v2684_v61  ;;  %v1957_v61 = vld [vmem:[%s4141_s8 + $0x38] sm:$0xff] }
 0x144   : > { %2976 = vmatmul.mubr.msk.f32.vlgmr.msra.gmra.mrb[8].mxu0 %vm1054_vm4, %v3780_v2  ;;  %2979 = vmatmul.mubr.msk.f32.vlgmr.msra.gmra.mrb[0].mxu1 %vm1054_vm4, %v414_v3 }
 0x145   : > { %3216 = vmatpush3.bf16.msra.mxu1 %v3213_v1  ;;  %v1596_v1 = vld [vmem:[%s4139_s6 + $0x8] sm:$0xff] }
 0x146   : > { %3218 = vmatprep.subr.bf16.mxu1 %v3217_v6  ;;  %v3241_v3 = vpack.c.bf16 %v1596_v1, %v1595_v0  ;;  %v2709_v0 = vld [vmem:[%s4141_s8 + $0x88] sm:$0xff] }
 0x217   : > { %v2977_v10 = vpop.f32.mrb[8].mxu0  ;;  %v2980_v11 = vpop.f32.mrb[0].mxu1 }
 0x218   : > { %v1158_v13 = vrot.slane %v2977_v10, 7  ;;  %v1167_v14 = vrot.slane %v2977_v10, 1  ;;  %v1162_v15 = vrot.slane %v2980_v11, 7  ;;  %v1171_v16 = vrot.slane %v2980_v11, 1  ;;  %v1133_v17 = vpop.f32.mrb[9].mxu0  ;;  %v1143_v18 = vpop.f32.mrb[1].mxu1 }
 0x219   : > { %v1157_v19 = vrot.slane %v1133_v17, 7  ;;  %v1166_v20 = vrot.slane %v1133_v17, 1  ;;  %v1160_v21 = vrot.slane %v1143_v18, 7  ;;  %v1169_v22 = vrot.slane %v1143_v18, 1  ;;  %2985 = vmatprep.mubr.msk.f32.mxu1 %vm456_vm1, %v1133_v17 }
 0x21a   : > { %2986 = vmatmul.mubr.msk.f32.vlgmr.msra.gmra.mrb[2].mxu1 %vm456_vm1, %v2977_v10  ;;  %v1174_v30 = vsel %vm438_vm0, %v1171_v16, 0.0 }
 0x21b   : > { %v1159_v23 = vsel %vm1156_vm5, %v1157_v19, %v1158_v13  ;;  %v1170_v24 = vsel %vm438_vm0, %v1167_v14, %v1169_v22  ;;  %2988 = vmatprep.mubr.msk.f32.mxu1 %vm456_vm1, %v1143_v18  ;;  %3220 = vmatpush3.bf16.msra.mxu1 %v3217_v6  ;;  %v1161_v25 = vsel %vm1156_vm5, %v1158_v13, %v1160_v21  ;;  %v1165_v29 = vsel %vm1156_vm5, 0.0, %v1157_v19  ;;  %v2690_v13 = vld [vmem:[%s4139_s6 + $0x40] sm:$0xff]  ;;  %v2692_v19 = vld [vmem:[%s4139_s6 + $0x50] sm:$0xff] }
 0x21c   : > { %3222 = vmatprep.subr.bf16.mxu1 %v3221_v12  ;;  %v1163_v26 = vsel %vm1156_vm5, %v1160_v21, %v1162_v15  ;;  %v1168_v27 = vsel %vm438_vm0, %v1166_v20, %v1167_v14  ;;  %v1172_v28 = vsel %vm438_vm0, %v1169_v22, %v1171_v16  ;;  %v2691_v14 = vld [vmem:[%s4139_s6 + $0x48] sm:$0xff]  ;;  %v2693_v20 = vld [vmem:[%s4139_s6 + $0x58] sm:$0xff] }
 0x21d   : > { %v3249_v18 = vpack.c.bf16 %v2691_v14, %v2690_v13  ;;  %v3253_v21 = vpack.c.bf16 %v2693_v20, %v2692_v19  ;;  %v2714_v13 = vld [vmem:[%s4141_s8 + $0xb0] sm:$0xff]  ;;  %v2715_v14 = vld [vmem:[%s4141_s8 + $0xb8] sm:$0xff]  ;;  %v2283_v19 = vld [vmem:[%s4143_s10 + $0x8] sm:$0xff] }
 0x21e   : > { %2989 = vmatmul.mubr.msk.f32.gmra.mrb[4].mxu1 %vm456_vm1, %v2980_v11 }
 0x21f   : > { %2995 = vmatprep.mubr.msk.f32.mxu1 %vm456_vm1, %v1165_v29  ;;  %v1953_v29 = vld [vmem:[%s4141_s8 + $0x18] sm:$0xff] }
 0x222   : > { %2996 = vmatmul.mubr.msk.f32.vlgmr.msra.gmra.mrb[2].mxu1 %vm456_vm1, %v1159_v23  ;;  %v3483_v23 = vmov 0.0|0.0  }
 0x223   : > { %2998 = vmatprep.mubr.msk.f32.mxu1 %vm456_vm1, %v1161_v25  ;;  %3224 = vmatpush3.bf16.msra.mxu1 %v3221_v12  ;;  %v1950_v25 = vld [vmem:[%s4141_s8] sm:$0xff] }
 0x224   : > { %3257 = vmatprep.subr.bf16.mxu0 %v3483_v23 }
 0x226   : > { %2999 = vmatmul.mubr.msk.f32.gmra.mrb[4].mxu1 %vm456_vm1, %v1163_v26  ;;  %v1951_v26 = vld [vmem:[%s4141_s8 + $0x8] sm:$0xff] }
 0x227   : > { %3005 = vmatprep.mubr.msk.f32.mxu1 %vm456_vm1, %v1168_v27  ;;  %v3273_v27 = vpack.c.bf16 %v1951_v26, %v1950_v25  ;;  %v2286_v26 = vld [vmem:[%s4143_s10 + $0x20] sm:$0xff] }
 0x22a   : > { %3006 = vmatmul.mubr.msk.f32.vlgmr.msra.gmra.mrb[2].mxu1 %vm456_vm1, %v1170_v24  ;;  %v3485_v24 = vmov 0.0  }
 0x22b   : > { %3008 = vmatprep.mubr.msk.f32.mxu1 %vm456_vm1, %v1172_v28  ;;  %3059 = vmatprep.mubr.msk.f32.mxu0 %vm3484_vm7, %v3485_v24  ;;  %v1952_v28 = vld [vmem:[%s4141_s8 + $0x10] sm:$0xff] }
 0x22e   : > { %3009 = vmatmul.mubr.msk.f32.gmra.mrb[4].mxu1 %vm456_vm1, %v1174_v30  ;;  %v3276_v30 = vpack.c.bf16 %v1953_v29, %v1952_v28 }
 0x22f   : > { %3019 = vmatprep.mubr.msk.f32.mxu1 %vm1503_vm6, %v3752_v8 }
 0x2fd   : > { %v3007_v32 = vpop.f32.mrb[2].mxu1 }
 0x2fe   : > { %v1476_v33 = vadd.f32 %v3007_v32, %v2679_v31  ;;  %v1445_v34 = vpop.f32.mrb[3].mxu1  ;;  %v1955_v32 = vld [vmem:[%s4141_s8 + $0x28] sm:$0xff] }
 0x2ff   : > { %v1475_v35 = vadd.f32 %v2679_v31, %v1445_v34  ;;  %v2696_v34 = vld [vmem:[%s4140_s7] ss:$0 sm:$0xff] }
 0x300   : > { %v1480_v36 = vmax.f32 %v1476_v33, 0.0 }
 0x301   : > { %v1479_v37 = vmax.f32 %v1475_v35, 0.0  ;;  %v3010_v38 = vpop.f32.mrb[4].mxu1 }
 0x302   : > { %v1488_v39 = vrot.slane %v1480_v36, 1  ;;  %v1478_v40 = vadd.f32 %v3010_v38, %v2679_v31  ;;  %v1455_v41 = vpop.f32.mrb[5].mxu1 }
 0x303   : > { %v1487_v42 = vrot.slane %v1479_v37, 1  ;;  %v1477_v43 = vadd.f32 %v2679_v31, %v1455_v41  ;;  %v1954_v31 = vld [vmem:[%s4141_s8 + $0x20] sm:$0xff] }
 0x304   : > { %v1482_v44 = vmax.f32 %v1478_v40, 0.0  ;;  %v3279_v33 = vpack.c.bf16 %v1955_v32, %v1954_v31 }
 0x305   : > { %v1489_v45 = vsel %vm438_vm0, %v1487_v42, %v1488_v39  ;;  %v1481_v46 = vmax.f32 %v1477_v43, 0.0 }
 0x306   : > { %v1499_v47 = vmax.f32 %v1479_v37, %v1489_v45  ;;  %v1492_v48 = vrot.slane %v1482_v44, 1 }
 0x307   : > { %v1490_v49 = vrot.slane %v1481_v46, 1 }
 0x308   : > { %v1498_v50 = vsel %vm438_vm0, %v1492_v48, 0.0 }
 0x309   : > { %v1502_v51 = vmax.f32 %v1482_v44, %v1498_v50  ;;  %v1493_v52 = vsel %vm438_vm0, %v1490_v49, %v1492_v48  ;;  %v1491_v53 = vsel %vm438_vm0, %v1488_v39, %v1490_v49  ;;  %v2699_v48 = vld [vmem:[%s4141_s8 + $0x48] sm:$0xff] }
 0x30a   : > { %v1501_v54 = vmax.f32 %v1481_v46, %v1493_v52  ;;  %v1500_v55 = vmax.f32 %v1480_v36, %v1491_v53  ;;  %v2701_v52 = vld [vmem:[%s4141_s8 + $0x58] sm:$0xff] }
 0x30c   : > { %v3225_v56 = vpack.c.bf16 %v1500_v55, %v1499_v47  ;;  %v3229_v57 = vpack.c.bf16 %v1502_v51, %v1501_v54  ;;  %v2698_v47 = vld [vmem:[%s4141_s8 + $0x40] sm:$0xff]  ;;  %v2700_v51 = vld [vmem:[%s4141_s8 + $0x50] sm:$0xff]  ;;  %v2703_v55 = vld [vmem:[%s4141_s8 + $0x68] sm:$0xff] }
 0x30d   : > { %v3261_v50 = vpack.c.bf16 %v2699_v48, %v2698_v47  ;;  %v3264_v53 = vpack.c.bf16 %v2701_v52, %v2700_v51  ;;  %v2702_v54 = vld [vmem:[%s4141_s8 + $0x60] sm:$0xff]  ;;  %v2722_v47 = vld [vmem:[%s4143_s10 + $0x58] sm:$0xff] }
 0x30e   : > { %3226 = vmatprep.subr.bf16.mxu1 %v3225_v56  ;;  %v2726_v52 = vld [vmem:[%s4143_s10 + $0x78] sm:$0xff] }
 0x30f   : > { %3228 = vmatpush3.bf16.msra.mxu1 %v3225_v56  ;;  %v3267_v56 = vpack.c.bf16 %v2703_v55, %v2702_v54  ;;  %v2288_v54 = vld [vmem:[%s4143_s10 + $0x30] sm:$0xff]  ;;  %v2289_v55 = vld [vmem:[%s4143_s10 + $0x38] sm:$0xff] }
 0x310   : > { %3230 = vmatprep.subr.bf16.mxu1 %v3229_v57 }
 0x313   : > { %3232 = vmatpush3.bf16.msra.mxu1 %v3229_v57  ;;  %v2704_v57 = vld [vmem:[%s4141_s8 + $0x70] sm:$0xff] }
 0x314   : > { %3234 = vmatprep.subr.bf16.mxu1 %v3233_v60  ;;  %v3270_v59 = vpack.c.bf16 %v2705_v58, %v2704_v57  ;;  %v2729_v57 = vld [vmem:[%s4143_s10 + $0x80] sm:$0xff]  ;;  %v2730_v58 = vld [vmem:[%s4143_s10 + $0x88] sm:$0xff] }
 0x316   : > { %3020 = vmatmul.mubr.msk.f32.vlgmr.msra.gmra.mrb[6].mxu1 %vm1503_vm6, %v3780_v2  ;;  %v1598_v2 = vld [vmem:[%s4139_s6 + $0x18] sm:$0xff] }
 0x317   : > { %3236 = vmatpush3.bf16.msra.mxu1 %v3233_v60  ;;  %v3245_v10 = vpack.c.bf16 %v1598_v2, %v1597_v4  ;;  %v1956_v60 = vld [vmem:[%s4141_s8 + $0x30] sm:$0xff]  ;;  %v2711_v4 = vld [vmem:[%s4141_s8 + $0x98] sm:$0xff] }
 0x318   : > { %3238 = vmatprep.subr.bf16.mxu1 %v3237_v63  ;;  %v3282_v62 = vpack.c.bf16 %v1957_v61, %v1956_v60  ;;  %v3321_v60 = vpack.c.bf16 %v2730_v58, %v2729_v57 }
 0x31b   : > { %3240 = vmatpush3.bf16.msra.mxu1 %v3237_v63  ;;  %v2708_v63 = vld [vmem:[%s4141_s8 + $0x80] sm:$0xff] }
 0x31c   : > { %3242 = vmatprep.subr.bf16.mxu1 %v3241_v3  ;;  %v3285_v1 = vpack.c.bf16 %v2709_v0, %v2708_v63  ;;  %v2731_v63 = vld [vmem:[%s4143_s10 + $0x90] sm:$0xff]  ;;  %v2732_v0 = vld [vmem:[%s4143_s10 + $0x98] sm:$0xff] }
 0x3e9   : > { %v3021_v5 = vpop.f32.mrb[6].mxu1 }
 0x3ea   : > { %v1586_v6 = vrot.slane %v3021_v5, 7  ;;  %v1591_v7 = vrot.slane %v3021_v5, 1  ;;  %v1574_v9 = vpop.f32.mrb[7].mxu1 }
 0x3eb   : > { %v1585_v11 = vrot.slane %v1574_v9, 7  ;;  %v1590_v12 = vrot.slane %v1574_v9, 1  ;;  %3030 = vmatprep.mubr.msk.f32.mxu1 %vm1503_vm6, %v1574_v9 }
 0x3ec   : > { %3031 = vmatmul.mubr.msk.f32.vlgmr.msra.gmra.mrb[8].mxu1 %vm1503_vm6, %v3021_v5  ;;  %v1594_v22 = vsel %vm438_vm0, %v1591_v7, 0.0 }
 0x3ed   : > { %3244 = vmatpush3.bf16.msra.mxu1 %v3241_v3  ;;  %v1589_v15 = vsel %vm1156_vm5, 0.0, %v1585_v11  ;;  %v1587_v16 = vsel %vm1156_vm5, %v1585_v11, %v1586_v6  ;;  %v1592_v17 = vsel %vm438_vm0, %v1590_v12, %v1591_v7  ;;  %v2710_v3 = vld [vmem:[%s4141_s8 + $0x90] sm:$0xff]  ;;  %v2713_v11 = vld [vmem:[%s4141_s8 + $0xa8] sm:$0xff] }
 0x3ee   : > { %3041 = vmatprep.mubr.msk.f32.mxu1 %vm1503_vm6, %v1589_v15  ;;  %3246 = vmatprep.subr.bf16.mxu1 %v3245_v10  ;;  %v3288_v7 = vpack.c.bf16 %v2711_v4, %v2710_v3  ;;  %v3294_v15 = vpack.c.bf16 %v2715_v14, %v2714_v13  ;;  %v2733_v3 = vld [vmem:[%s4143_s10 + $0xa0] sm:$0xff]  ;;  %v2734_v4 = vld [vmem:[%s4143_s10 + $0xa8] sm:$0xff] }
 0x3f1   : > { %3248 = vmatpush3.bf16.msra.mxu1 %v3245_v10  ;;  %v2712_v10 = vld [vmem:[%s4141_s8 + $0xa0] sm:$0xff] }
 0x3f2   : > { %3250 = vmatprep.subr.bf16.mxu1 %v3249_v18  ;;  %v3291_v12 = vpack.c.bf16 %v2713_v11, %v2712_v10 }
 0x3f4   : > { %3042 = vmatmul.mubr.msk.f32.vlgmr.msra.gmra.mrb[8].mxu1 %vm1503_vm6, %v1587_v16 }
 0x3f5   : > { %3252 = vmatpush3.bf16.msra.mxu1 %v3249_v18  ;;  %3052 = vmatprep.mubr.msk.f32.mxu1 %vm1503_vm6, %v1592_v17  ;;  %v2282_v18 = vld [vmem:[%s4143_s10] sm:$0xff] }
 0x3f6   : > { %3254 = vmatprep.subr.bf16.mxu1 %v3253_v21  ;;  %v3309_v20 = vpack.c.bf16 %v2283_v19, %v2282_v18 }
 0x3f9   : > { %3256 = vmatpush3.bf16.msra.mxu1 %v3253_v21  ;;  %v2284_v21 = vld [vmem:[%s4143_s10 + $0x10] sm:$0xff] }
 0x3fa   : > { %3272 = vmatprep.subr.bf16.mxu1 %v3483_v23 }
 0x3fc   : > { %3053 = vmatmul.mubr.msk.f32.vlgmr.msra.gmra.mrb[8].mxu1 %vm1503_vm6, %v1594_v22  ;;  %v2285_v22 = vld [vmem:[%s4143_s10 + $0x18] sm:$0xff] }
 0x3fd   : > { %3097 = vmatprep.mubr.msk.f32.mxu1 %vm3484_vm7, %v3485_v24  ;;  %3274 = vmatpush3.bf16.msra.mxu1 %v3273_v27  ;;  %v3312_v25 = vpack.c.bf16 %v2285_v22, %v2284_v21  ;;  %v2287_v27 = vld [vmem:[%s4143_s10 + $0x28] sm:$0xff] }
 0x3fe   : > { %3275 = vmatprep.subr.bf16.mxu1 %v3483_v23  ;;  %v3315_v28 = vpack.c.bf16 %v2287_v27, %v2286_v26 }
 0x401   : > { %3277 = vmatpush3.bf16.msra.mxu1 %v3276_v30 }
 0x402   : > { %3278 = vmatprep.subr.bf16.mxu1 %v3483_v23 }
 0x405   : > { %3280 = vmatpush3.bf16.msra.mxu1 %v3279_v33 }
 0x406   : > { %3281 = vmatprep.subr.bf16.mxu1 %v3483_v23 }
 0x409   : > { %3283 = vmatpush3.bf16.msra.mxu1 %v3282_v62 }
 0x40a   : > { %3119 = vmatprep.subr.mxu1 %v3485_v24 }
 0x4cf   : > { %v3054_v35 = vpop.f32.mrb[8].mxu1 }
 0x4d0   : > { %v1858_v36 = vadd.f32 %v3054_v35, %v2696_v34  ;;  %v1839_v37 = vpop.f32.mrb[9].mxu1  ;;  %v2717_v35 = vld [vmem:[%s4142_s9] ss:$0 sm:$0xff] }
 0x4d1   : > { %v1857_v38 = vadd.f32 %v2696_v34, %v1839_v37 }
 0x4d2   : > { %v1860_v39 = vmax.f32 %v1858_v36, 0.0 }
 0x4d3   : > { %v1859_v40 = vmax.f32 %v1857_v38, 0.0 }
 0x4d4   : > { %v1864_v41 = vrot.slane %v1860_v39, 1 }
 0x4d5   : > { %v1863_v42 = vrot.slane %v1859_v40, 1 }
 0x4d6   : > { %v1868_v43 = vsel %vm438_vm0, %v1864_v41, 0.0 }
 0x4d7   : > { %v1870_v44 = vmax.f32 %v1860_v39, %v1868_v43  ;;  %v1865_v45 = vsel %vm438_vm0, %v1863_v42, %v1864_v41  ;;  %v2719_v41 = vld [vmem:[%s4143_s10 + $0x40] sm:$0xff]  ;;  %v2720_v42 = vld [vmem:[%s4143_s10 + $0x48] sm:$0xff] }
 0x4d8   : > { %v1869_v46 = vmax.f32 %v1859_v40, %v1865_v45  ;;  %v3297_v45 = vpack.c.bf16 %v2720_v42, %v2719_v41 }
 0x4da   : > { %v3258_v49 = vpack.c.bf16 %v1870_v44, %v1869_v46  ;;  %v2721_v46 = vld [vmem:[%s4143_s10 + $0x50] sm:$0xff] }
 0x4db   : > { %v3300_v48 = vpack.c.bf16 %v2722_v47, %v2721_v46 }
 0x4dc   : > { %3259 = vmatpush3.bf16.msra.mxu0 %v3258_v49  ;;  %v2723_v49 = vld [vmem:[%s4143_s10 + $0x60] sm:$0xff] }
 0x4dd   : > { %3260 = vmatprep.subr.bf16.mxu0 %v3483_v23 }
 0x4df   : > { %3060 = vmatmul.mubr.msk.f32.vlgmr.msra.gmra.mrb[10].mxu0 %vm456_vm1, %v3752_v8 }
 0x4e0   : > { %3262 = vmatpush3.bf16.msra.mxu0 %v3261_v50  ;;  %3078 = vmatprep.mubr.msk.f32.mxu0 %vm3484_vm7, %v3485_v24  ;;  %v2724_v50 = vld [vmem:[%s4143_s10 + $0x68] sm:$0xff] }
 0x4e1   : > { %3263 = vmatprep.subr.bf16.mxu0 %v3483_v23  ;;  %v3303_v51 = vpack.c.bf16 %v2724_v50, %v2723_v49 }
 0x4e4   : > { %3265 = vmatpush3.bf16.msra.mxu0 %v3264_v53 }
 0x4e5   : > { %3266 = vmatprep.subr.bf16.mxu0 %v3483_v23 }
 0x4e8   : > { %3268 = vmatpush3.bf16.msra.mxu0 %v3267_v56  ;;  %v3318_v56 = vpack.c.bf16 %v2289_v55, %v2288_v54 }
 0x4e9   : > { %3269 = vmatprep.subr.bf16.mxu0 %v3483_v23 }
 0x4ec   : > { %3271 = vmatpush3.bf16.msra.mxu0 %v3270_v59 }
 0x4ed   : > { %3284 = vmatprep.subr.bf16.mxu0 %v3483_v23 }
 0x5b2   : > { %v1939_v2 = vpop.f32.mrb[10].mxu0 }
 0x5b3   : > { %v1944_v5 = vrot.slane %v1939_v2, 7  ;;  %v3061_v6 = vpop.f32.mrb[11].mxu0  ;;  %3079 = vmatmul.mubr.msk.f32.vlgmr.msra.gmra.mrb[12].mxu0 %vm1054_vm4, %v1939_v2  ;;  %v1947_v16 = vrot.slane %v1939_v2, 1  ;;  %v3327_v2 = vpack.c.bf16 %v2734_v4, %v2733_v3 }
 0x5b4   : > { %3286 = vmatpush3.bf16.msra.mxu0 %v3285_v1  ;;  %3116 = vmatprep.mubr.msk.f32.mxu0 %vm3484_vm7, %v3485_v24  ;;  %v3324_v1 = vpack.c.bf16 %v2732_v0, %v2731_v63 }
 0x5b5   : > { %v1946_v9 = vsel %vm1156_vm5, 0.0, %v1944_v5  ;;  %3287 = vmatprep.subr.bf16.mxu0 %v3483_v23  ;;  %v1949_v17 = vsel %vm438_vm0, %v1947_v16, 0.0  ;;  %v2735_v5 = vld [vmem:[%s4143_s10 + $0xb0] sm:$0xff] }
 0x5b6   : > { %3098 = vmatmul.mubr.msk.f32.vlgmr.msra.gmra.mrb[10].mxu1 %vm1054_vm4, %v1946_v9 }
 0x5b7   : > { %3121 = vmatprep.mubr.msk.f32.mxu1 %vm3484_vm7, %v3485_v24 }
 0x5b8   : > { %3289 = vmatpush3.bf16.msra.mxu0 %v3288_v7 }
 0x5b9   : > { %3290 = vmatprep.subr.bf16.mxu0 %v3483_v23 }
 0x5bc   : > { %3292 = vmatpush3.bf16.msra.mxu0 %v3291_v12 }
 0x5bd   : > { %3293 = vmatprep.subr.bf16.mxu0 %v3483_v23 }
 0x5c0   : > { %3295 = vmatpush3.bf16.msra.mxu0 %v3294_v15  ;;  %v2738_v15 = vld [vmem:[%s4144_s11] ss:$0 sm:$0xff] }
 0x5c1   : > { %3308 = vmatprep.subr.bf16.mxu0 %v3483_v23 }
 0x5c3   : > { %3117 = vmatmul.mubr.msk.f32.vlgmr.msra.gmra.mrb[14].mxu0 %vm1054_vm4, %v1949_v17 }
 0x5c4   : > { %3159 = vmatprep.mubr.msk.f32.mxu0 %vm3484_vm7, %v3485_v24  ;;  %3310 = vmatpush3.bf16.msra.mxu0 %v3309_v20 }
 0x5c5   : > { %3311 = vmatprep.subr.bf16.mxu0 %v3483_v23 }
 0x5c8   : > { %3313 = vmatpush3.bf16.msra.mxu0 %v3312_v25 }
 0x5c9   : > { %3314 = vmatprep.subr.bf16.mxu0 %v3483_v23 }
 0x5cc   : > { %3316 = vmatpush3.bf16.msra.mxu0 %v3315_v28 }
 0x5cd   : > { %3317 = vmatprep.subr.bf16.mxu0 %v3483_v23 }
 0x5d0   : > { %3319 = vmatpush3.bf16.msra.mxu0 %v3318_v56 }
 0x686   : > { %v2035_v29 = vpop.f32.mrb[12].mxu0 }
 0x687   : > { %v3080_v30 = vpop.f32.mrb[13].mxu0 }
 0x689   : > { %v2108_v31 = vpop.f32.mrb[10].mxu1 }
 0x68a   : > { %v2109_v32 = vadd.f32 %v2108_v31, %v2035_v29  ;;  %v3099_v33 = vpop.f32.mrb[11].mxu1 }
 0x696   : > { %v2190_v34 = vpop.f32.mrb[14].mxu0 }
 0x697   : > { %v2194_v36 = vadd.f32 %v2190_v34, %v2109_v32  ;;  %v3118_v37 = vpop.f32.mrb[15].mxu0 }
 0x699   : > { %v2202_v38 = vadd.f32 %v2717_v35, %v2194_v36 }
 0x69b   : > { %v2203_v39 = vmax.f32 %v2202_v38, 0.0 }
 0x69d   : > { %v2205_v40 = vrot.slane %v2203_v39, 1 }
 0x69f   : > { %v2207_v43 = vsel %vm438_vm0, %v2205_v40, 0.0 }
 0x6a0   : > { %v2208_v44 = vmax.f32 %v2203_v39, %v2207_v43 }
 0x6a2   : > { %3120 = vmatpush3.msra.mxu1 %v2208_v44 }
 0x6a3   : > { %3122 = vmatmul.mubr.msk.f32.vlgmr.msra.gmra.mrb[12].mxu1 %vm2209_vm8, %v3752_v8  ;;  %3296 = vmatprep.subr.bf16.mxu1 %v3483_v23  ;;  %v2725_v8 = vld [vmem:[%s4143_s10 + $0x70] sm:$0xff] }
 0x6a4   : > { %3298 = vmatpush3.bf16.msra.mxu1 %v3297_v45  ;;  %3140 = vmatprep.mubr.msk.f32.mxu1 %vm3484_vm7, %v3485_v24  ;;  %v3306_v53 = vpack.c.bf16 %v2726_v52, %v2725_v8 }
 0x6a5   : > { %3299 = vmatprep.subr.bf16.mxu1 %v3483_v23 }
 0x6a8   : > { %3301 = vmatpush3.bf16.msra.mxu1 %v3300_v48 }
 0x6a9   : > { %3302 = vmatprep.subr.bf16.mxu1 %v3483_v23 }
 0x6ac   : > { %3304 = vmatpush3.bf16.msra.mxu1 %v3303_v51 }
 0x6ad   : > { %3305 = vmatprep.subr.bf16.mxu1 %v3483_v23 }
 0x6b0   : > { %3307 = vmatpush3.bf16.msra.mxu1 %v3306_v53 }
 0x6b1   : > { %3320 = vmatprep.subr.bf16.mxu1 %v3483_v23 }
 0x776   : > { %v2278_v59 = vpop.f32.mrb[12].mxu1 }
 0x777   : > { %v2300_v61 = vrot.slane %v2278_v59, 1  ;;  %v3123_v62 = vpop.f32.mrb[13].mxu1  ;;  %3160 = vmatmul.mubr.msk.f32.vlgmr.msra.gmra.mrb[16].mxu0 %vm1054_vm4, %v2278_v59  ;;  %v2454_v7 = vrot.slane %v2278_v59, 2 }
 0x779   : > { %3141 = vmatmul.mubr.msk.f32.vlgmr.msra.gmra.mrb[14].mxu1 %vm1054_vm4, %v2300_v61 }
 0x77a   : > { %3322 = vmatpush3.bf16.msra.mxu1 %v3321_v60  ;;  %3178 = vmatprep.mubr.msk.f32.mxu1 %vm3484_vm7, %v3485_v24  ;;  %v2736_v24 = vld [vmem:[%s4143_s10 + $0xb8] sm:$0xff] }
 0x77b   : > { %3323 = vmatprep.subr.bf16.mxu1 %v3483_v23  ;;  %v3330_v6 = vpack.c.bf16 %v2736_v24, %v2735_v5 }
 0x77e   : > { %3325 = vmatpush3.bf16.msra.mxu1 %v3324_v1 }
 0x77f   : > { %3326 = vmatprep.subr.bf16.mxu1 %v3483_v23 }
 0x782   : > { %3328 = vmatpush3.bf16.msra.mxu1 %v3327_v2 }
 0x783   : > { %3329 = vmatprep.subr.bf16.mxu1 %v3483_v23 }
 0x786   : > { %3331 = vmatpush3.bf16.msra.mxu1 %v3330_v6 }
 0x789   : > { %3179 = vmatmul.mubr.msk.f32.vlgmr.msra.gmra.mrb[16].mxu1 %vm1054_vm4, %v2454_v7 }
 0x84a   : > { %v2441_v9 = vpop.f32.mrb[16].mxu0 }
 0x84b   : > { %v3161_v10 = vpop.f32.mrb[17].mxu0 }
 0x84c   : > { %v2369_v11 = vpop.f32.mrb[14].mxu1 }
 0x84d   : > { %v2442_v12 = vadd.f32 %v2441_v9, %v2369_v11  ;;  %v3142_v13 = vpop.f32.mrb[15].mxu1 }
 0x85c   : > { %v2523_v14 = vpop.f32.mrb[16].mxu1 }
 0x85d   : > { %v2527_v16 = vadd.f32 %v2523_v14, %v2442_v12  ;;  %v3180_v17 = vpop.f32.mrb[17].mxu1 }
 0x85f   : > { %v2535_v18 = vadd.f32 %v2738_v15, %v2527_v16 }
 0x861   : > { %v2536_v23 = vmax.f32 %v2535_v18, 0.0 }
 0x863   : > { %v2538_v19 = vsel %vm2537_vm9, %v2536_v23, -inf }
 0x864   : > { %v2539_v20 = vrot.slane %v2538_v19, 4 }
 0x866   : > { %v2540_v21 = vmax.f32 %v2538_v19, %v2539_v20 }
 0x868   : > { %v2541_v22 = vrot.slane %v2540_v21, 2 }
 0x86a   : > { %v2542_v25 = vmax.f32 %v2540_v21, %v2541_v22 }
 0x86c   : > { %v2543_v26 = vrot.slane %v2542_v25, 1 }
 0x86e   : > { %v2544_v27 = vmax.f32 %v2542_v25, %v2543_v26 }
 0x870   : > { %2546 = vst.msk [vmem:[%s405_s26] sm:$0x1] %vm2545_vm10, %v2544_v27 }
 0x871   : > { %3432 = shalt.err (!%p3429_p3)
}
 0x872   : > { %s3433_s23 = scalar_lea.hbm %s4091_s16, 16  ;;  %s3437_s29 = scalar_lea.hbm %s4145_s12, 32 }
 0x873   : > { %p3434_p4 = scmp.ne.s32.totalorder %s4091_s16, %s3433_s23  ;;  %p3438_p9 = scmp.lt.u32.totalorder %s4091_s16, %s4145_s12 }
 0x874   : > { %p3439_p10 = scmp.lt.u32.totalorder %s3437_s29, %s3433_s23  ;;  %p3441_p12 = scmp.lt.u32.totalorder %s3433_s23, %s4091_s16 }
 0x875   : > { %p3435_p7 = pnand %p3434_p4, %p3590_p5 }
 0x876   : > { %p3440_p11 = por %p3439_p10, %p3438_p9 }
 0x877   : > { %p3436_p8 = pneg %p3435_p7 }
 0x878   : > { %p3442_p13 = por %p3441_p12, %p3440_p11 }
 0x87a   : > { %p3443_p0 = pnand %p3442_p13, %p3436_p8 }
 0x87c   : > { %3446 = shalt.err (!%p3443_p0)
}
 0x87d   : > { %3377 = dma.vmem_to_hbm [thread:$0]  (%p3590_p5), %s4093_s28, 16, %s4091_s16, %s2548_s17  }
 0x87e PF: > { %p3383_p1 = scmp.ge.s32.totalorder %s3481_s24, 2  ;;  %s2572_s18 = sand.u32 1, %s3469_s21  }
 0x87f   : > { %s2573_s19 = scalar_lea.sflag [#allocation3], %s2572_s18 }
 0x880   : > { %p3380_p2 = pnand %p3383_p1, %p3594_p6 }
 0x882   : > { %3464 = dma.done.wait (!%p3380_p2), %s2573_s19, 16  }
 0x883   : > { %3466 = vsyncadd (!%p3380_p2), %s2573_s19, 4294967280  ;;  %s4151_s20 = sld [smem:[#allocation5_spill]]  ;;  %s4152_s23 = sld [smem:[#allocation6_spill]] }
 0x884   : > { %p22_p3 = scmp.ge.s32.totalorder %s3577_s27, 4   ;;  %s4153_s21 = smov %s3473_s22 }
 0x885   : > { %s4155_s24 = smov %s3577_s27 }
 0x886   :  { %24 = sbr.rel (!%p22_p3) target bundleno = 3 (0x3), region = 114 }
 0x889   : > { %s4154_s22 = smov %s4151_s20 }
 0x88d   :  { %2577 = vsyncpa [#allocation3], 1 }
 0x88e   :  { %2579 = vsyncpa [#allocation3 + $0x1], 1 }

</bundles_post_ra>
